<compile_context>
chip_gen: v6e
topology: v6e:2x2x1
jax: 0.10.0
libtpu: 0.0.40
codegen_flags: <defaults>
</compile_context>

<pallas_src>
import functools

import jax
import jax.numpy as jnp
from jax import lax
from jax.experimental import pallas as pl
from jax.experimental.pallas import tpu as pltpu


def _ceil_to(x, m):
    return ((x + m - 1) // m) * m


def _pose2feat_kernel(x_ref, w_ref, shift_ref, o_ref, *, Wp, Mt):
    # x_ref:     (1, 1, Lt, C_in)   bf16 flat, zero-padded, haloed row tile (row pitch Wp)
    # w_ref:     (9, C_in, C_out)   bf16 conv taps with BN scale folded in
    # shift_ref: (1, C_out)         f32 folded conv-bias + BN shift
    # o_ref:     (1, 1, Mt, C_out)  bf16 output tile in flat row-pitch layout (Mt = TH*Wp)
    acc = None
    for ky in range(3):
        for kx in range(3):
            # Row-pitch shift-and-add: each tap is a contiguous sublane-offset
            # window of the flat padded tile (no per-tap slice+reshape relayout).
            window = x_ref[0, 0, pl.ds(ky * Wp + kx, Mt), :]           # (Mt, C_in) bf16
            part = jnp.dot(window, w_ref[ky * 3 + kx],
                           preferred_element_type=jnp.float32)          # (Mt, C_out) f32
            acc = part if acc is None else acc + part                   # single acc chain
    out = jnp.maximum(acc + shift_ref[...], 0.0)                         # bias/BN + ReLU
    o_ref[0, 0] = out.astype(o_ref.dtype)                                # bf16 store


def pose2feat_forward(img_feat, joint_heatmap, params, *, max_tile_flat_rows=4096):
    """img_feat: (N, 64, H, W) NCHW f32;  joint_heatmap: (N, J, H, W) NCHW f32."""
    w_hwio, bias, gamma, beta, mean, var, eps = params

    N, _, H, W = img_feat.shape
    C_in = img_feat.shape[1] + joint_heatmap.shape[1]
    C_out = w_hwio.shape[-1]
    Wp = W + 2                                   # padded row pitch (2 junk output cols/row)

    # --- Row tiling: TH output rows per grid step (bounded VMEM at any H*W). ---
    TH = min(H, max(8, max_tile_flat_rows // Wp))
    T = pl.cdiv(H, TH)
    H_pad = T * TH                               # extra bottom rows are junk, sliced later
    Lt = (TH + 3) * Wp                           # haloed input tile flat rows
    Mt = TH * Wp                                 # output tile flat rows

    # --- Fold eval-mode BatchNorm: scale -> weights, shift -> epilogue add. ---
    inv_std = 1.0 / jnp.sqrt(var + eps)
    scale = (gamma * inv_std).astype(jnp.float32)                                 # (C_out,)
    shift = (beta + scale * (bias - mean)).reshape(1, C_out).astype(jnp.float32)
    w_taps = (w_hwio.astype(jnp.float32) * scale[None, None, None, :]
              ).reshape(9, C_in, C_out).astype(jnp.bfloat16)

    # --- Layout glue (fused XLA producer): concat -> NHWC -> pad -> bf16 -> haloed tiles.
    feat = jnp.concatenate([img_feat, joint_heatmap], axis=1)
    x = jnp.transpose(feat, (0, 2, 3, 1))                                         # NHWC
    x = jnp.pad(x, ((0, 0), (1, H_pad - H + 2), (1, 1), (0, 0)))                  # (N,H_pad+3,Wp,Cin)
    x = x.astype(jnp.bfloat16)
    if T == 1:
        x_tiles = x[:, None]                                                      # no copy
    else:
        x_tiles = jnp.stack([x[:, t * TH: t * TH + TH + 3] for t in range(T)], axis=1)
    x_flat = x_tiles.reshape(N, T, Lt, C_in)                                      # (N,T,Lt,Cin)

    # --- VMEM budget with lane (->128) and sublane padding; per-chip clamp. ---
    lanes_in = _ceil_to(C_in, 128)
    lanes_out = _ceil_to(C_out, 128)
    est = (2 * _ceil_to(Lt, 16) * lanes_in * 2          # double-buffered bf16 input tile
           + 2 * _ceil_to(Mt, 16) * lanes_out * 2       # double-buffered bf16 output tile
           + 2 * 9 * _ceil_to(C_in, 16) * lanes_out * 2  # weights (2 bufs by default)
           + 2 * 8 * lanes_out * 4                       # shift
           + _ceil_to(Mt, 8) * lanes_out * 4             # live f32 accumulator
           + (4 << 20))                                  # compiler scratch slack
    try:
        vmem_cap = int(getattr(pltpu.get_tpu_info(), "vmem_capacity_bytes", 64 << 20))
    except Exception:
        vmem_cap = 64 << 20                              # conservative (v7x-sized) fallback
    vmem_limit = int(min(max(est, 16 << 20), (vmem_cap * 3) // 4))

    kernel = functools.partial(_pose2feat_kernel, Wp=Wp, Mt=Mt)
    out_flat = pl.pallas_call(
        kernel,
        out_shape=jax.ShapeDtypeStruct((N, T, Mt, C_out), jnp.bfloat16),
        grid_spec=pltpu.PrefetchScalarGridSpec(
            num_scalar_prefetch=0,
            grid=(N, T),
            in_specs=[
                pl.BlockSpec((1, 1, Lt, C_in), lambda n, t: (n, t, 0, 0)),
                pl.BlockSpec((9, C_in, C_out), lambda n, t: (0, 0, 0)),
                pl.BlockSpec((1, C_out), lambda n, t: (0, 0)),
            ],
            out_specs=pl.BlockSpec((1, 1, Mt, C_out), lambda n, t: (n, t, 0, 0)),
        ),
        compiler_params=pltpu.CompilerParams(
            dimension_semantics=("parallel", "parallel"),
            vmem_limit_bytes=vmem_limit),
    )(x_flat, w_taps, shift)

    # Drop junk columns / junk bottom rows; return NCHW f32 for module fidelity.
    out_nhwc = out_flat.reshape(N, H_pad, Wp, C_out)[:, :H, :W, :]
    return jnp.transpose(out_nhwc, (0, 3, 1, 2)).astype(jnp.float32)


def pose2feat_reference(img_feat, joint_heatmap, params):
    """Pure-JAX f32 reference mirroring the PyTorch forward (eval-mode BN)."""
    w_hwio, bias, gamma, beta, mean, var, eps = params
    feat = jnp.concatenate([img_feat, joint_heatmap], axis=1)
    w_oihw = jnp.transpose(w_hwio, (3, 2, 0, 1))
    y = lax.conv_general_dilated(
        feat, w_oihw, window_strides=(1, 1), padding="SAME",
        dimension_numbers=("NCHW", "OIHW", "NCHW"))
    y = y + bias[None, :, None, None]
    y = (y - mean[None, :, None, None]) * (1.0 / jnp.sqrt(var + eps))[None, :, None, None]
    y = y * gamma[None, :, None, None] + beta[None, :, None, None]
    return jnp.maximum(y, 0.0)


if __name__ == "__main__":
    # Small shapes consistent with Pose2Feat: img_feat has 64 channels,
    # joint heatmap has `joint_num` channels, same spatial size.
    N, J, H, W = 2, 4, 16, 16
    C_IMG = 64
    C_IN = C_IMG + J
    C_OUT = 64

    key = jax.random.PRNGKey(0)
    k_img, k_hm, k_w, k_b, k_g, k_be, k_m, k_v = jax.random.split(key, 8)

    img_feat = jax.random.normal(k_img, (N, C_IMG, H, W), jnp.float32)
    joint_heatmap = jax.random.normal(k_hm, (N, J, H, W), jnp.float32)

    # Deterministic parameters (shapes per make_conv_layers([64+J, 64])):
    #   Conv2d(68, 64, 3, padding=1) -> BatchNorm2d(64) -> ReLU
    w_oihw = jax.random.normal(k_w, (C_OUT, C_IN, 3, 3), jnp.float32) * 0.05
    w_hwio = jnp.transpose(w_oihw, (2, 3, 1, 0))                  # (3,3,Cin,Cout)
    bias = jax.random.normal(k_b, (C_OUT,), jnp.float32) * 0.1
    gamma = 1.0 + 0.1 * jax.random.normal(k_g, (C_OUT,), jnp.float32)
    beta = 0.1 * jax.random.normal(k_be, (C_OUT,), jnp.float32)
    run_mean = 0.1 * jax.random.normal(k_m, (C_OUT,), jnp.float32)
    run_var = 1.0 + 0.5 * jax.random.uniform(k_v, (C_OUT,), jnp.float32)
    eps = 1e-5
    params = (w_hwio, bias, gamma, beta, run_mean, run_var, eps)

    ref = pose2feat_reference(img_feat, joint_heatmap, params)

    # Single-tile path (T == 1 at this spatial size).
    out = pose2feat_forward(img_feat, joint_heatmap, params)
    jax.block_until_ready(out)
    assert out.shape == (N, C_OUT, H, W), out.shape
    max_err = float(jnp.max(jnp.abs(out - ref)))
    assert jnp.allclose(out, ref, rtol=3e-2, atol=3e-2), max_err

    # Force the row-tiled path (TH=8 -> T=2) to validate halo tiling end-to-end.
    out_tiled = pose2feat_forward(img_feat, joint_heatmap, params,
                                  max_tile_flat_rows=8 * (W + 2))
    jax.block_until_ready(out_tiled)
    max_err_tiled = float(jnp.max(jnp.abs(out_tiled - ref)))
    assert jnp.allclose(out_tiled, ref, rtol=3e-2, atol=3e-2), max_err_tiled

    print("KERNEL_OK")
</pallas_src>

<mosaic_0001>
module attributes {stable_mosaic.version = 11 : i64} {
  func.func @_pose2feat_kernel(%arg0: i32, %arg1: i32, %arg2: memref<1x1x342x68xbf16, #tpu.memory_space<vmem>>, %arg3: memref<9x68x64xbf16, #tpu.memory_space<vmem>>, %arg4: memref<1x64xf32, #tpu.memory_space<vmem>>, %arg5: memref<1x1x288x64xbf16, #tpu.memory_space<vmem>>) attributes {dimension_semantics = [#tpu.dimension_semantics<parallel>, #tpu.dimension_semantics<parallel>], iteration_bounds = array<i64: 2, 1>, scalar_prefetch = 0 : i64, scratch_operands = 0 : i64, tpu.core_type = #tpu.core_type<tc>, window_params = [{transform_indices = @transform_0, window_bounds = array<i64: 1, 1, 342, 68>}, {pipeline_mode = #tpu.pipeline_mode<synchronous>, transform_indices = @transform_1, window_bounds = array<i64: 9, 68, 64>}, {pipeline_mode = #tpu.pipeline_mode<synchronous>, transform_indices = @transform_2, window_bounds = array<i64: 1, 64>}, {transform_indices = @transform_3, window_bounds = array<i64: 1, 1, 288, 64>}]} {
    %c0 = arith.constant 0 : index
    %c0_0 = arith.constant 0 : index
    %c0_1 = arith.constant 0 : index
    %c0_2 = arith.constant 0 : index
    %0 = vector.load %arg2[%c0, %c0_0, %c0_1, %c0_2] : memref<1x1x342x68xbf16, #tpu.memory_space<vmem>>, vector<1x1x288x68xbf16>
    %1 = vector.shape_cast %0 : vector<1x1x288x68xbf16> to vector<288x68xbf16>
    %c0_3 = arith.constant 0 : index
    %c0_4 = arith.constant 0 : index
    %c0_5 = arith.constant 0 : index
    %2 = vector.load %arg3[%c0_3, %c0_4, %c0_5] : memref<9x68x64xbf16, #tpu.memory_space<vmem>>, vector<1x68x64xbf16>
    %3 = vector.shape_cast %2 : vector<1x68x64xbf16> to vector<68x64xbf16>
    %cst = arith.constant dense<0.000000e+00> : vector<288x64xf32>
    %4 = tpu.matmul %1, %3, %cst {dimension_numbers = #tpu.dot_dimension_numbers<[1], [0], [0], [1], [0, 0, 1, 1], [], []>} : vector<288x68xbf16>, vector<68x64xbf16>, vector<288x64xf32> -> vector<288x64xf32>
    %c0_6 = arith.constant 0 : index
    %c0_7 = arith.constant 0 : index
    %c1 = arith.constant 1 : index
    %c0_8 = arith.constant 0 : index
    %5 = vector.load %arg2[%c0_6, %c0_7, %c1, %c0_8] : memref<1x1x342x68xbf16, #tpu.memory_space<vmem>>, vector<1x1x288x68xbf16>
    %6 = vector.shape_cast %5 : vector<1x1x288x68xbf16> to vector<288x68xbf16>
    %c1_9 = arith.constant 1 : index
    %c0_10 = arith.constant 0 : index
    %c0_11 = arith.constant 0 : index
    %7 = vector.load %arg3[%c1_9, %c0_10, %c0_11] : memref<9x68x64xbf16, #tpu.memory_space<vmem>>, vector<1x68x64xbf16>
    %8 = vector.shape_cast %7 : vector<1x68x64xbf16> to vector<68x64xbf16>
    %cst_12 = arith.constant dense<0.000000e+00> : vector<288x64xf32>
    %9 = tpu.matmul %6, %8, %cst_12 {dimension_numbers = #tpu.dot_dimension_numbers<[1], [0], [0], [1], [0, 0, 1, 1], [], []>} : vector<288x68xbf16>, vector<68x64xbf16>, vector<288x64xf32> -> vector<288x64xf32>
    %10 = arith.addf %4, %9 : vector<288x64xf32>
    %c0_13 = arith.constant 0 : index
    %c0_14 = arith.constant 0 : index
    %c2 = arith.constant 2 : index
    %c0_15 = arith.constant 0 : index
    %11 = vector.load %arg2[%c0_13, %c0_14, %c2, %c0_15] : memref<1x1x342x68xbf16, #tpu.memory_space<vmem>>, vector<1x1x288x68xbf16>
    %12 = vector.shape_cast %11 : vector<1x1x288x68xbf16> to vector<288x68xbf16>
    %c2_16 = arith.constant 2 : index
    %c0_17 = arith.constant 0 : index
    %c0_18 = arith.constant 0 : index
    %13 = vector.load %arg3[%c2_16, %c0_17, %c0_18] : memref<9x68x64xbf16, #tpu.memory_space<vmem>>, vector<1x68x64xbf16>
    %14 = vector.shape_cast %13 : vector<1x68x64xbf16> to vector<68x64xbf16>
    %cst_19 = arith.constant dense<0.000000e+00> : vector<288x64xf32>
    %15 = tpu.matmul %12, %14, %cst_19 {dimension_numbers = #tpu.dot_dimension_numbers<[1], [0], [0], [1], [0, 0, 1, 1], [], []>} : vector<288x68xbf16>, vector<68x64xbf16>, vector<288x64xf32> -> vector<288x64xf32>
    %16 = arith.addf %10, %15 : vector<288x64xf32>
    %c0_20 = arith.constant 0 : index
    %c0_21 = arith.constant 0 : index
    %c18 = arith.constant 18 : index
    %c0_22 = arith.constant 0 : index
    %17 = vector.load %arg2[%c0_20, %c0_21, %c18, %c0_22] : memref<1x1x342x68xbf16, #tpu.memory_space<vmem>>, vector<1x1x288x68xbf16>
    %18 = vector.shape_cast %17 : vector<1x1x288x68xbf16> to vector<288x68xbf16>
    %c3 = arith.constant 3 : index
    %c0_23 = arith.constant 0 : index
    %c0_24 = arith.constant 0 : index
    %19 = vector.load %arg3[%c3, %c0_23, %c0_24] : memref<9x68x64xbf16, #tpu.memory_space<vmem>>, vector<1x68x64xbf16>
    %20 = vector.shape_cast %19 : vector<1x68x64xbf16> to vector<68x64xbf16>
    %cst_25 = arith.constant dense<0.000000e+00> : vector<288x64xf32>
    %21 = tpu.matmul %18, %20, %cst_25 {dimension_numbers = #tpu.dot_dimension_numbers<[1], [0], [0], [1], [0, 0, 1, 1], [], []>} : vector<288x68xbf16>, vector<68x64xbf16>, vector<288x64xf32> -> vector<288x64xf32>
    %22 = arith.addf %16, %21 : vector<288x64xf32>
    %c0_26 = arith.constant 0 : index
    %c0_27 = arith.constant 0 : index
    %c19 = arith.constant 19 : index
    %c0_28 = arith.constant 0 : index
    %23 = vector.load %arg2[%c0_26, %c0_27, %c19, %c0_28] : memref<1x1x342x68xbf16, #tpu.memory_space<vmem>>, vector<1x1x288x68xbf16>
    %24 = vector.shape_cast %23 : vector<1x1x288x68xbf16> to vector<288x68xbf16>
    %c4 = arith.constant 4 : index
    %c0_29 = arith.constant 0 : index
    %c0_30 = arith.constant 0 : index
    %25 = vector.load %arg3[%c4, %c0_29, %c0_30] : memref<9x68x64xbf16, #tpu.memory_space<vmem>>, vector<1x68x64xbf16>
    %26 = vector.shape_cast %25 : vector<1x68x64xbf16> to vector<68x64xbf16>
    %cst_31 = arith.constant dense<0.000000e+00> : vector<288x64xf32>
    %27 = tpu.matmul %24, %26, %cst_31 {dimension_numbers = #tpu.dot_dimension_numbers<[1], [0], [0], [1], [0, 0, 1, 1], [], []>} : vector<288x68xbf16>, vector<68x64xbf16>, vector<288x64xf32> -> vector<288x64xf32>
    %28 = arith.addf %22, %27 : vector<288x64xf32>
    %c0_32 = arith.constant 0 : index
    %c0_33 = arith.constant 0 : index
    %c20 = arith.constant 20 : index
    %c0_34 = arith.constant 0 : index
    %29 = vector.load %arg2[%c0_32, %c0_33, %c20, %c0_34] : memref<1x1x342x68xbf16, #tpu.memory_space<vmem>>, vector<1x1x288x68xbf16>
    %30 = vector.shape_cast %29 : vector<1x1x288x68xbf16> to vector<288x68xbf16>
    %c5 = arith.constant 5 : index
    %c0_35 = arith.constant 0 : index
    %c0_36 = arith.constant 0 : index
    %31 = vector.load %arg3[%c5, %c0_35, %c0_36] : memref<9x68x64xbf16, #tpu.memory_space<vmem>>, vector<1x68x64xbf16>
    %32 = vector.shape_cast %31 : vector<1x68x64xbf16> to vector<68x64xbf16>
    %cst_37 = arith.constant dense<0.000000e+00> : vector<288x64xf32>
    %33 = tpu.matmul %30, %32, %cst_37 {dimension_numbers = #tpu.dot_dimension_numbers<[1], [0], [0], [1], [0, 0, 1, 1], [], []>} : vector<288x68xbf16>, vector<68x64xbf16>, vector<288x64xf32> -> vector<288x64xf32>
    %34 = arith.addf %28, %33 : vector<288x64xf32>
    %c0_38 = arith.constant 0 : index
    %c0_39 = arith.constant 0 : index
    %c36 = arith.constant 36 : index
    %c0_40 = arith.constant 0 : index
    %35 = vector.load %arg2[%c0_38, %c0_39, %c36, %c0_40] : memref<1x1x342x68xbf16, #tpu.memory_space<vmem>>, vector<1x1x288x68xbf16>
    %36 = vector.shape_cast %35 : vector<1x1x288x68xbf16> to vector<288x68xbf16>
    %c6 = arith.constant 6 : index
    %c0_41 = arith.constant 0 : index
    %c0_42 = arith.constant 0 : index
    %37 = vector.load %arg3[%c6, %c0_41, %c0_42] : memref<9x68x64xbf16, #tpu.memory_space<vmem>>, vector<1x68x64xbf16>
    %38 = vector.shape_cast %37 : vector<1x68x64xbf16> to vector<68x64xbf16>
    %cst_43 = arith.constant dense<0.000000e+00> : vector<288x64xf32>
    %39 = tpu.matmul %36, %38, %cst_43 {dimension_numbers = #tpu.dot_dimension_numbers<[1], [0], [0], [1], [0, 0, 1, 1], [], []>} : vector<288x68xbf16>, vector<68x64xbf16>, vector<288x64xf32> -> vector<288x64xf32>
    %40 = arith.addf %34, %39 : vector<288x64xf32>
    %c0_44 = arith.constant 0 : index
    %c0_45 = arith.constant 0 : index
    %c37 = arith.constant 37 : index
    %c0_46 = arith.constant 0 : index
    %41 = vector.load %arg2[%c0_44, %c0_45, %c37, %c0_46] : memref<1x1x342x68xbf16, #tpu.memory_space<vmem>>, vector<1x1x288x68xbf16>
    %42 = vector.shape_cast %41 : vector<1x1x288x68xbf16> to vector<288x68xbf16>
    %c7 = arith.constant 7 : index
    %c0_47 = arith.constant 0 : index
    %c0_48 = arith.constant 0 : index
    %43 = vector.load %arg3[%c7, %c0_47, %c0_48] : memref<9x68x64xbf16, #tpu.memory_space<vmem>>, vector<1x68x64xbf16>
    %44 = vector.shape_cast %43 : vector<1x68x64xbf16> to vector<68x64xbf16>
    %cst_49 = arith.constant dense<0.000000e+00> : vector<288x64xf32>
    %45 = tpu.matmul %42, %44, %cst_49 {dimension_numbers = #tpu.dot_dimension_numbers<[1], [0], [0], [1], [0, 0, 1, 1], [], []>} : vector<288x68xbf16>, vector<68x64xbf16>, vector<288x64xf32> -> vector<288x64xf32>
    %46 = arith.addf %40, %45 : vector<288x64xf32>
    %c0_50 = arith.constant 0 : index
    %c0_51 = arith.constant 0 : index
    %c38 = arith.constant 38 : index
    %c0_52 = arith.constant 0 : index
    %47 = vector.load %arg2[%c0_50, %c0_51, %c38, %c0_52] : memref<1x1x342x68xbf16, #tpu.memory_space<vmem>>, vector<1x1x288x68xbf16>
    %48 = vector.shape_cast %47 : vector<1x1x288x68xbf16> to vector<288x68xbf16>
    %c8 = arith.constant 8 : index
    %c0_53 = arith.constant 0 : index
    %c0_54 = arith.constant 0 : index
    %49 = vector.load %arg3[%c8, %c0_53, %c0_54] : memref<9x68x64xbf16, #tpu.memory_space<vmem>>, vector<1x68x64xbf16>
    %50 = vector.shape_cast %49 : vector<1x68x64xbf16> to vector<68x64xbf16>
    %cst_55 = arith.constant dense<0.000000e+00> : vector<288x64xf32>
    %51 = tpu.matmul %48, %50, %cst_55 {dimension_numbers = #tpu.dot_dimension_numbers<[1], [0], [0], [1], [0, 0, 1, 1], [], []>} : vector<288x68xbf16>, vector<68x64xbf16>, vector<288x64xf32> -> vector<288x64xf32>
    %52 = arith.addf %46, %51 : vector<288x64xf32>
    %c0_56 = arith.constant 0 : index
    %c0_57 = arith.constant 0 : index
    %53 = vector.load %arg4[%c0_56, %c0_57] : memref<1x64xf32, #tpu.memory_space<vmem>>, vector<1x64xf32>
    %54 = vector.broadcast %53 : vector<1x64xf32> to vector<288x64xf32>
    %55 = arith.addf %52, %54 : vector<288x64xf32>
    %cst_58 = arith.constant 0.000000e+00 : f32
    %56 = vector.broadcast %cst_58 : f32 to vector<288x64xf32>
    %57 = arith.maximumf %55, %56 : vector<288x64xf32>
    %58 = arith.truncf %57 : vector<288x64xf32> to vector<288x64xbf16>
    %c0_59 = arith.constant 0 : index
    %c0_60 = arith.constant 0 : index
    %c0_61 = arith.constant 0 : index
    %c0_62 = arith.constant 0 : index
    %59 = vector.load %arg5[%c0_59, %c0_60, %c0_61, %c0_62] : memref<1x1x288x64xbf16, #tpu.memory_space<vmem>>, vector<1x1x288x64xbf16>
    %60 = vector.shape_cast %59 : vector<1x1x288x64xbf16> to vector<288x64xbf16>
    %61 = vector.shape_cast %58 : vector<288x64xbf16> to vector<1x1x288x64xbf16>
    tpu.vector_store %arg5[%c0_59, %c0_60, %c0_61, %c0_62], %61 {strides = array<i32>} : memref<1x1x288x64xbf16, #tpu.memory_space<vmem>>, vector<1x1x288x64xbf16>,
    return
  }
  func.func @transform_0(%arg0: i32, %arg1: i32) -> (i32, i32, i32, i32) {
    %c0_i32 = arith.constant 0 : i32
    %c0_i32_0 = arith.constant 0 : i32
    %c0_i32_1 = arith.constant 0 : i32
    return %arg0, %arg1, %c0_i32, %c0_i32_0 : i32, i32, i32, i32
  }
  func.func @transform_1(%arg0: i32, %arg1: i32) -> (i32, i32, i32) {
    %c0_i32 = arith.constant 0 : i32
    %c0_i32_0 = arith.constant 0 : i32
    %c0_i32_1 = arith.constant 0 : i32
    %c0_i32_2 = arith.constant 0 : i32
    return %c0_i32, %c0_i32_0, %c0_i32_1 : i32, i32, i32
  }
  func.func @transform_2(%arg0: i32, %arg1: i32) -> (i32, i32) {
    %c0_i32 = arith.constant 0 : i32
    %c0_i32_0 = arith.constant 0 : i32
    %c0_i32_1 = arith.constant 0 : i32
    return %c0_i32, %c0_i32_0 : i32, i32
  }
  func.func @transform_3(%arg0: i32, %arg1: i32) -> (i32, i32, i32, i32) {
    %c0_i32 = arith.constant 0 : i32
    %c0_i32_0 = arith.constant 0 : i32
    %c0_i32_1 = arith.constant 0 : i32
    return %arg0, %arg1, %c0_i32, %c0_i32_0 : i32, i32, i32, i32
  }
}

</mosaic_0001>

<bundles_post_ra>
// kernel: tpu_custom_call.1
= control target key start
LH: loop header
LB: loop body
LE: loop exit
PB: predicated region body
PF: predicated region fallthrough
CT: control target
= control target key end

     0   :  { %s5564_s12 = smov 0   ;;  %s5566_s13 = smov 0   ;;  %s7132_s0 = inlined_call_operand.vmem [shape: bf16[2,1,342,68], index: 0, kind: input, shape index: {}]   ;;  %s7133_s1 = inlined_call_operand.vmem [shape: bf16[9,68,64], index: 1, kind: input, shape index: {}]   ;;  %s7134_s2 = inlined_call_operand.vmem [shape: f32[1,64], index: 2, kind: input, shape index: {}]   ;;  %s7135_s3 = inlined_call_operand.vmem [shape: bf16[2,1,288,64], index: 3, kind: output, shape index: {}]  }
   0x1   :  { %s5568_s14 = smov 0  }
   0x2 LB: > { %s25_s15 = sadd.s32 1, %s5538_s13  ;;  %p4327_p0 = scmp.ge.s32.totalorder %s5542_s14, 1  ;;  %s5542_s14 = sphi %s5568_s14, %s13_s14   ;;  %s5538_s13 = sphi %s5566_s13, %s7189_s13   ;;  %s5534_s12 = sphi %s5564_s12, %s7188_s12  }
   0x3   : > { %p27_p1 = scmp.ge.s32.totalorder %s25_s15, 2  ;;  %p157_p2 = scmp.lt.s32.totalorder %s5542_s14, 3 }
   0x5   : > { %s7191_s15 = smov (%p27_p1, %s25_s15), 0  ;;  %p158_p3 = pnand %p4327_p0, %p157_p2 }
   0x7   : > { %161 = sbr.rel (%p158_p3) target bundleno = 561 (0x231), region = 32 }
   0xc   : > { %v5413_v0 = vld [vmem:[%s7133_s1 + $0x44] ss:$0 sps:$4 sm:$0x33]   ;;  %vm588_vm0 = vcmask 1041408   ;;  %v5414_v1 = vld [vmem:[%s7133_s1 + $0x3c] sm:$0xff]   ;;  %p189_p4 = scmp.lt.s32.totalorder %s5534_s12, 1 }
   0xd   : > { %5377 = vmatprep.subr.msk.bf16.mxu0 %vm588_vm0, %v5413_v0  ;;  %5378 = vmatprep.subr.msk.bf16.mxu1 %vm588_vm0, %v5413_v0  ;;  %v590_v2 = vsel %vm588_vm0, %v5413_v0, 0  ;;  %v5415_v3 = vld [vmem:[%s7133_s1 + $0x34] sm:$0xff]   ;;  %v5416_v4 = vld [vmem:[%s7133_s1 + $0x2c] sm:$0xff]   ;;  %vm357_vm1 = vsmask.f32 7424  ;;  %vm533_vm2 = vcmask 556032  }
   0xe   : > { %4954 = vmatpush3.bf16.msra.mxu0 %v590_v2  ;;  %5372 = vmatpush3.bf16.msra.mxu1 %v590_v2  ;;  %s7193_s12 = smov (!%p189_p4, %s5534_s12), 1  ;;  %v5603_v5 = vld [vmem:[%s7133_s1 + $0x68] ss:$0 sps:$4 sm:$0x33]   ;;  %v5430_v52 = vld [vmem:[%s7133_s1 + $0x60] sm:$0xff]   ;;  %v5431_v53 = vld [vmem:[%s7133_s1 + $0x18] sm:$0xff]  }
   0xf   : > { %4955 = vmatprep.subr.bf16.mxu0 %v5414_v1  ;;  %5368 = vmatprep.subr.bf16.mxu1 %v5414_v1  ;;  %s5387_s22 = smul.u32 172, %s7193_s12  ;;  %v5613_v6 = vld [vmem:[%s7133_s1 + $0x20] ss:$0 sps:$4 sm:$0x33]   ;;  %v5627_v11 = vsel %vm588_vm0, %v5603_v5, 0  ;;  %v5417_v12 = vld [vmem:[%s7133_s1 + $0x24] sm:$0xff]  }
  0x10   : > { %v5647_v20 = vsel %vm588_vm0, %v5613_v6, 0  ;;  %vm1026_vm3 = vcmask 1046528   ;;  %vm2331_vm4 = vcmask 1045504   ;;  %vm1849_vm5 = vsmask.f32 6400 }
  0x11   : > { %s5608_s29 = scalar_lea.vmem %s7132_s0, %s5387_s22  ;;  %vm3636_vm6 = vcmask 1044480   ;;  %vm3154_vm7 = vsmask.f32 5376  ;;  %s5388_s22 = smul.u32 144, %s7193_s12  ;;  %vm4194_vm8 = vcmask 519168  }
  0x12   : > { %4956 = vmatpush3.bf16.msra.mxu0 %v5414_v1  ;;  %5373 = vmatpush3.bf16.msra.mxu1 %v5414_v1  ;;  %v208_v7 = vld [vmem:[%s5608_s29] sm:$0xf]  ;;  %v5617_v8 = vld [vmem:[%s5608_s29 + $0x4] sm:$0xf]  ;;  %v5623_v10 = vld [vmem:[%s5608_s29 + $0x8] sm:$0xff]  }
  0x13   : > { %4957 = vmatprep.subr.bf16.mxu0 %v5415_v3  ;;  %5369 = vmatprep.subr.bf16.mxu1 %v5415_v3  ;;  %v5620_v9 = vcombine.low %v208_v7, %v5617_v8  ;;  %v366_v15 = vshll.u32 %v5623_v10, 16  ;;  %v370_v16 = vshrl.u32 %v5623_v10, 16  ;;  %v5637_v17 = vld [vmem:[%s5608_s29 + $0x50] sm:$0xff]   ;;  %v5640_v18 = vld [vmem:[%s5608_s29 + $0x58] sm:$0xff]   ;;  %v5655_v28 = vld [vmem:[%s5608_s29 + $0x60] sm:$0xff]   ;;  %s6983_s25 = scalar_lea.vmem %s7135_s3, %s5388_s22 }
  0x14   : > { %v5643_v19 = vld [vmem:[%s5608_s29 + $0x10] sm:$0xff]   ;;  %v438_v23 = vshll.u32 %v5637_v17, 16  ;;  %v442_v24 = vshrl.u32 %v5637_v17, 16  ;;  %v446_v25 = vshll.u32 %v5640_v18, 16  ;;  %v450_v26 = vshrl.u32 %v5640_v18, 16  ;;  %v5660_v32 = vld [vmem:[%s5608_s29 + $0x18] sm:$0xff]  }
  0x15   : > { %v359_v13 = vshrl.u32 %v5620_v9, 16  ;;  %v361_v14 = vshll.u32 %v5620_v9, 16  ;;  %v368_v22 = vrot.slane %v366_v15, 1  ;;  %v374_v27 = vshll.u32 %v5643_v19, 16  ;;  %v5668_v40 = vld [vmem:[%s5608_s29 + $0x68] sm:$0xff]   ;;  %v5672_v42 = vld [vmem:[%s5608_s29 + $0x20] sm:$0xff]  }
  0x16   : > { %4958 = vmatpush3.bf16.msra.mxu0 %v5415_v3  ;;  %5374 = vmatpush3.bf16.msra.mxu1 %v5415_v3  ;;  %v5657_v31 = vrot.slane %v438_v23, 1  ;;  %v448_v33 = vrot.slane %v446_v25, 1  ;;  %v454_v35 = vshll.u32 %v5655_v28, 16  ;;  %v378_v36 = vshrl.u32 %v5643_v19, 16  ;;  %v5677_v47 = vld [vmem:[%s5608_s29 + $0x70] sm:$0xff]   ;;  %v5689_v54 = vld [vmem:[%s5608_s29 + $0x28] sm:$0xff]  }
  0x17   : > { %4959 = vmatprep.subr.bf16.mxu0 %v5416_v4  ;;  %5370 = vmatprep.subr.bf16.mxu1 %v5416_v4  ;;  %v363_v21 = vrot.slane %v361_v14, 1  ;;  %v372_v30 = vor.u32 %v370_v16, %v368_v22  ;;  %v376_v34 = vrot.slane %v374_v27, 1  ;;  %v382_v39 = vshll.u32 %v5660_v32, 16  ;;  %v5436_v1 = vld [vmem:[%s7133_s1 + $0x58] sm:$0xff]   ;;  %v5722_v15 = vld [vmem:[%s5608_s29 + $0x80] sm:$0xff]  }
  0x18   : > { %v444_v38 = vor.u32 %v442_v24, %v5657_v31  ;;  %v458_v41 = vshrl.u32 %v5655_v28, 16  ;;  %v452_v43 = vor.u32 %v450_v26, %v448_v33  ;;  %v456_v45 = vrot.slane %v454_v35, 1  ;;  %v5714_v7 = vld [vmem:[%s5608_s29 + $0x78] sm:$0xff]  }
  0x19   : > { %v364_v29 = vor.u32 %v363_v21, %v359_v13  ;;  %v377_v44 = vsel %vm357_vm1, %v372_v30, %v376_v34  ;;  %v380_v46 = vor.u32 %v378_v36, %v376_v34  ;;  %v384_v49 = vrot.slane %v382_v39, 1  ;;  %v5718_v13 = vld [vmem:[%s5608_s29 + $0x30] sm:$0xff]   ;;  %v5735_v34 = vld [vmem:[%s5608_s29 + $0x38] sm:$0xff]  }
  0x1a   : > { %4960 = vmatpush3.bf16.msra.mxu0 %v5416_v4  ;;  %5375 = vmatpush3.bf16.msra.mxu1 %v5416_v4  ;;  %v449_v48 = vsel %vm357_vm1, %v444_v38, %v448_v33  ;;  %v462_v50 = vshll.u32 %v5668_v40, 16  ;;  %v386_v51 = vshrl.u32 %v5660_v32, 16  ;;  %v457_v55 = vsel %vm357_vm1, %v452_v43, %v456_v45 }
  0x1b   : > { %4961 = vmatprep.subr.bf16.mxu0 %v5417_v12  ;;  %5371 = vmatprep.subr.bf16.mxu1 %v5417_v12  ;;  %v369_v37 = vsel %vm357_vm1, %v364_v29, %v368_v22  ;;  %v460_v56 = vor.u32 %v458_v41, %v456_v45  ;;  %v390_v57 = vshll.u32 %v5672_v42, 16  ;;  %v466_v58 = vshrl.u32 %v5668_v40, 16  ;;  %v5437_v29 = vld [vmem:[%s7133_s1 + $0x10] sm:$0xff]  }
  0x1c   : > { %4963 = vmatprep.mubr.msk.bf16.mxu0 %vm533_vm2, %v369_v37  ;;  %4983 = vmatprep.mubr.msk.bf16.mxu1 %vm533_vm2, %v449_v48  ;;  %v385_v59 = vsel %vm357_vm1, %v380_v46, %v384_v49  ;;  %v464_v60 = vrot.slane %v462_v50, 1  ;;  %v470_v61 = vshll.u32 %v5677_v47, 16  ;;  %v388_v62 = vor.u32 %v386_v51, %v384_v49  ;;  %v5742_v37 = vld [vmem:[%s5608_s29 + $0x88] sm:$0xff]  }
  0x1d   : > { %v392_v63 = vrot.slane %v390_v57, 1  ;;  %v394_v0 = vshrl.u32 %v5672_v42, 16  ;;  %v402_v14 = vshrl.u32 %v5689_v54, 16  ;;  %v478_v21 = vshll.u32 %v5714_v7, 16 }
  0x1e   : > { %4962 = vmatpush3.bf16.msra.mxu0 %v5417_v12  ;;  %5376 = vmatpush3.bf16.msra.mxu1 %v5417_v12  ;;  %v465_v2 = vsel %vm357_vm1, %v460_v56, %v464_v60  ;;  %v468_v3 = vor.u32 %v466_v58, %v464_v60  ;;  %v472_v4 = vrot.slane %v470_v61, 1  ;;  %v474_v12 = vshrl.u32 %v5677_v47, 16  ;;  %v5443_v60 = vld [vmem:[%s7133_s1 + $0x50] sm:$0xff]   ;;  %v5444_v61 = vld [vmem:[%s7133_s1] sm:$0xff]  }
  0x1f   : > { %5380 = vmatprep.subr.msk.bf16.mxu0 %vm588_vm0, %v5603_v5  ;;  %5379 = vmatprep.subr.msk.bf16.mxu1 %vm588_vm0, %v5613_v6  ;;  %v398_v5 = vshll.u32 %v5689_v54, 16  ;;  %v396_v6 = vor.u32 %v394_v0, %v392_v63  ;;  %v393_v22 = vsel %vm357_vm1, %v388_v62, %v392_v63  ;;  %v406_v24 = vshll.u32 %v5718_v13, 16 }
  0x20   : > { %v476_v16 = vor.u32 %v474_v12, %v472_v4  ;;  %v473_v23 = vsel %vm357_vm1, %v468_v3, %v472_v4  ;;  %v486_v25 = vshll.u32 %v5722_v15, 16  ;;  %v480_v27 = vrot.slane %v478_v21, 1  ;;  %v5446_v3 = vld [vmem:[%s7133_s1 + $0x48] sm:$0xff]   ;;  %v1012_v21 = vld [vmem:[%s5608_s29] sm:$0xe] }
  0x21   : > { %4964 = vmatmul.mubr.msk.bf16.vlgmr.msra.gmra.mxu0 %vm533_vm2, %v377_v44  ;;  %4984 = vmatmul.mubr.msk.bf16.vlgmr.msra.gmra.mxu1 %vm533_vm2, %v457_v55  ;;  %v408_v30 = vrot.slane %v406_v24, 1  ;;  %v410_v35 = vshrl.u32 %v5718_v13, 16  ;;  %v490_v38 = vshrl.u32 %v5722_v15, 16  ;;  %v414_v43 = vshll.u32 %v5735_v34, 16  ;;  %v5749_v44 = vld [vmem:[%s5608_s29 + $0x40] sm:$0xff]   ;;  %v5442_v55 = vld [vmem:[%s7133_s1 + $0x8] sm:$0xff]  }
  0x22   : > { %5046 = vmatpush3.bf16.msra.mxu0 %v5627_v11  ;;  %4967 = vmatprep.mubr.msk.bf16.mxu0 %vm533_vm2, %v385_v59  ;;  %v400_v11 = vrot.slane %v398_v5, 1  ;;  %v488_v33 = vrot.slane %v486_v25, 1  ;;  %v481_v36 = vsel %vm357_vm1, %v476_v16, %v480_v27  ;;  %v494_v48 = vshll.u32 %v5742_v37, 16 }
  0x23   : > { %4987 = vmatprep.mubr.msk.bf16.mxu1 %vm533_vm2, %v465_v2  ;;  %5000 = vmatpush3.bf16.msra.mxu1 %v5647_v20  ;;  %v482_v20 = vshrl.u32 %v5714_v7, 16  ;;  %v412_v45 = vor.u32 %v410_v35, %v408_v30  ;;  %v416_v49 = vrot.slane %v414_v43, 1  ;;  %v418_v50 = vshrl.u32 %v5735_v34, 16 }
  0x24   : > { %5047 = vmatprep.subr.bf16.mxu0 %v5430_v52  ;;  %5001 = vmatprep.subr.bf16.mxu1 %v5431_v53  ;;  %v401_v26 = vsel %vm357_vm1, %v396_v6, %v400_v11  ;;  %v404_v39 = vor.u32 %v402_v14, %v400_v11  ;;  %v492_v46 = vor.u32 %v490_v38, %v488_v33  ;;  %v422_v51 = vshll.u32 %v5749_v44, 16  ;;  %v5447_v11 = vld [vmem:[%s7133_s1 + $0x8c] ss:$0 sps:$4 sm:$0x33]  }
  0x25   : > { %v484_v41 = vor.u32 %v482_v20, %v480_v27  ;;  %v498_v58 = vshrl.u32 %v5742_v37, 16  ;;  %v417_v62 = vsel %vm357_vm1, %v412_v45, %v416_v49  ;;  %v426_v2 = vshrl.u32 %v5749_v44, 16  ;;  %v5449_v20 = vld [vmem:[%s7133_s1 + $0xb0] ss:$0 sps:$4 sm:$0x33]  }
  0x26   : > { %5048 = vmatpush3.bf16.msra.mxu0 %v5430_v52  ;;  %v5441_v52 = vld [vmem:[%s5608_s29 + $0x90] ss:$0 sps:$4 sm:$0x11]   ;;  %v409_v56 = vsel %vm357_vm1, %v404_v39, %v408_v30  ;;  %v424_v0 = vrot.slane %v422_v51, 1  ;;  %v420_v4 = vor.u32 %v418_v50, %v416_v49  ;;  %v1028_v30 = vrot.slane %v5623_v10, 1  ;;  %v5450_v39 = vld [vmem:[%s7133_s1 + $0x84] sm:$0xff]  }
  0x27   : > { %5002 = vmatpush3.bf16.msra.mxu1 %v5431_v53  ;;  %5049 = vmatprep.subr.bf16.mxu0 %v5436_v1  ;;  %v496_v53 = vrot.slane %v494_v48, 1  ;;  %v489_v57 = vsel %vm357_vm1, %v484_v41, %v488_v33  ;;  %v502_v59 = vshll.u32 %v5441_v52, 16  ;;  %v1620_v38 = vsel %vm588_vm0, %v5447_v11, 0 }
  0x28   : > { %5003 = vmatprep.subr.bf16.mxu1 %v5437_v29  ;;  %v428_v14 = vor.u32 %v426_v2, %v424_v0  ;;  %v1032_v41 = vrot.slane %v5660_v32, 1  ;;  %v2102_v45 = vsel %vm588_vm0, %v5449_v20, 0  ;;  %v1034_v49 = vrot.slane %v5672_v42, 1  ;;  %v5900_v2 = vld [vmem:[%s5608_s29 + $0x10] sm:$0xff]  }
  0x29   : > { %4968 = vmatmul.mubr.msk.bf16.gmra.mxu0 %vm533_vm2, %v393_v22  ;;  %4988 = vmatmul.mubr.msk.bf16.gmra.mxu1 %vm533_vm2, %v473_v23  ;;  %v497_v63 = vsel %vm357_vm1, %v492_v46, %v496_v53  ;;  %v500_v5 = vor.u32 %v498_v58, %v496_v53  ;;  %v504_v6 = vrot.slane %v502_v59, 1  ;;  %v425_v22 = vsel %vm357_vm1, %v420_v4, %v424_v0  ;;  %v5451_v46 = vld [vmem:[%s7133_s1 + $0xa8] sm:$0xff]   ;;  %v5455_v53 = vld [vmem:[%s7133_s1 + $0x98] sm:$0xff]  }
  0x2a   : > { %4971 = vmatprep.mubr.msk.bf16.mxu0 %vm533_vm2, %v401_v26  ;;  %4991 = vmatprep.mubr.msk.bf16.mxu1 %vm533_vm2, %v481_v36  ;;  %v4413_v26 = vcombine.low %v1012_v21, %v5617_v8  ;;  %v1060_v8 = vrot.slane %v5742_v37, 1  ;;  %v1062_v36 = vrot.slane %v5441_v52, 1  ;;  %v1036_v50 = vrot.slane %v5689_v54, 1  ;;  %v1362_v0 = vld [vmem:[%s5608_s29 + $0xc] sm:$0xf]  ;;  %v5904_v4 = vld [vmem:[%s5608_s29 + $0x18] sm:$0xff]  }
  0x2b   : > { %5050 = vmatpush3.bf16.msra.mxu0 %v5436_v1  ;;  %5004 = vmatpush3.bf16.msra.mxu1 %v5437_v29  ;;  %v5770_v1 = vld [vmem:[%s5608_s29 + $0x48] sm:$0xff]   ;;  %v505_v23 = vsel %vm357_vm1, %v500_v5, %v504_v6  ;;  %v1035_v51 = vsel %vm1026_vm3, %v1032_v41, %v1034_v49 }
  0x2c   : > { %5005 = vmatprep.subr.bf16.mxu1 %v5442_v55  ;;  %5051 = vmatprep.subr.bf16.mxu0 %v5443_v60  ;;  %v430_v12 = vshll.u32 %v5770_v1, 16  ;;  %v434_v24 = vshrl.u32 %v5770_v1, 16  ;;  %v1027_v29 = vrot.slane %v4413_v26, 1  ;;  %v1037_v52 = vsel %vm1026_vm3, %v1034_v49, %v1036_v50  ;;  %v1361_v21 = vld [vmem:[%s5608_s29 + $0x8] sm:$0xe] }
  0x2e   : > { %v432_v16 = vrot.slane %v430_v12, 1  ;;  %v1029_v35 = vsel %vm1026_vm3, %v1027_v29, %v1028_v30  ;;  %v5909_v12 = vld [vmem:[%s5608_s29 + $0x20] sm:$0xff]  }
  0x2f   : > { %5006 = vmatpush3.bf16.msra.mxu1 %v5442_v55  ;;  %5052 = vmatpush3.bf16.msra.mxu0 %v5443_v60  ;;  %v5859_v55 = vld [vmem:[%s7133_s1 + $0xd4] ss:$0 sps:$4 sm:$0x33]   ;;  %v1042_v60 = vrot.slane %v5749_v44, 1 }
  0x30   : > { %5007 = vmatprep.subr.bf16.mxu1 %v5444_v61  ;;  %5053 = vmatprep.subr.bf16.mxu0 %v5446_v3  ;;  %v433_v25 = vsel %vm357_vm1, %v428_v14, %v432_v16  ;;  %v436_v27 = vor.u32 %v434_v24, %v432_v16  ;;  %v1050_v16 = vrot.slane %v5655_v28, 1  ;;  %v5930_v24 = vld [vmem:[%s5608_s29 + $0x30] sm:$0xff]  }
  0x31   : > { %4972 = vmatmul.mubr.msk.bf16.gmra.mxu0 %vm533_vm2, %v409_v56  ;;  %4992 = vmatmul.mubr.msk.bf16.gmra.mxu1 %vm533_vm2, %v489_v57  ;;  %v1038_v56 = vrot.slane %v5718_v13, 1  ;;  %v1040_v57 = vrot.slane %v5735_v34, 1 }
  0x32   : > { %4975 = vmatprep.mubr.msk.bf16.mxu0 %vm533_vm2, %v417_v62  ;;  %4995 = vmatprep.mubr.msk.bf16.mxu1 %vm533_vm2, %v497_v63  ;;  %v441_v33 = vsel %vm357_vm1, %v436_v27, %v5657_v31  ;;  %v1030_v31 = vrot.slane %v5643_v19, 1  ;;  %v1048_v63 = vrot.slane %v5640_v18, 1  ;;  %v2341_v27 = vrot.slane %v5930_v24, 2 }
  0x33   : > { %5008 = vmatpush3.bf16.msra.mxu1 %v5444_v61  ;;  %5054 = vmatpush3.bf16.msra.mxu0 %v5446_v3  ;;  %v1039_v58 = vsel %vm1026_vm3, %v1036_v50, %v1038_v56  ;;  %v1041_v59 = vsel %vm1026_vm3, %v1038_v56, %v1040_v57  ;;  %v1044_v61 = vrot.slane %v5770_v1, 1  ;;  %v5975_v50 = vld [vmem:[%s5608_s29 + $0x58] sm:$0xff]  }
  0x34   : > { %5381 = vmatprep.subr.msk.bf16.mxu1 %vm588_vm0, %v5447_v11  ;;  %5382 = vmatprep.subr.msk.bf16.mxu0 %vm588_vm0, %v5449_v20  ;;  %v1031_v43 = vsel %vm1026_vm3, %v1028_v30, %v1030_v31  ;;  %v1033_v48 = vsel %vm1026_vm3, %v1030_v31, %v1032_v41  ;;  %v2335_v11 = vrot.slane %v5904_v4, 2  ;;  %v5922_v20 = vld [vmem:[%s5608_s29 + $0x28] sm:$0xff]   ;;  %v1051_v29 = vsel %vm1026_vm3, %v1048_v63, %v1050_v16 }
  0x35   : > { %v1045_v62 = vsel %vm1026_vm3, %v1042_v60, %v1044_v61  ;;  %v4446_v30 = vcombine.low %v1361_v21, %v1362_v0  ;;  %v1054_v31 = vrot.slane %v5677_v47, 1  ;;  %v1056_v41 = vrot.slane %v5714_v7, 1 }
  0x36   : > { %v1871_v21 = vshll.u32 %v5904_v4, 16 }
  0x39   : > { %4976 = vmatmul.mubr.msk.bf16.gmra.mxu0 %vm533_vm2, %v425_v22  ;;  %4996 = vmatmul.mubr.msk.bf16.gmra.mxu1 %vm533_vm2, %v505_v23  ;;  %v1052_v23 = vrot.slane %v5668_v40, 1 }
  0x3a   : > { %4979 = vmatprep.mubr.msk.bf16.mxu0 %vm533_vm2, %v433_v25  ;;  %5009 = vmatprep.mubr.msk.bf16.mxu1 %vm533_vm2, %v5620_v9  ;;  %v5815_v9 = vsel %vm1026_vm3, %v1060_v8, %v1062_v36 }
  0x3b   : > { %v1053_v36 = vsel %vm1026_vm3, %v1050_v16, %v1052_v23  ;;  %v1055_v56 = vsel %vm1026_vm3, %v1052_v23, %v1054_v31 }
  0x41   : > { %4980 = vmatmul.mubr.msk.bf16.gmra.mxu0 %vm533_vm2, %v441_v33  ;;  %5010 = vmatmul.mubr.msk.bf16.vlgmr.msra.gmra.mxu1 %vm533_vm2, %v5623_v10  ;;  %v5452_v10 = vld [vmem:[%s7133_s1 + $0x7c] sm:$0xff]  }
  0x42   : > { %5013 = vmatprep.mubr.msk.bf16.mxu1 %vm533_vm2, %v5643_v19  ;;  %5055 = vmatprep.mubr.msk.bf16.mxu0 %vm533_vm2, %v1029_v35  ;;  %v5454_v19 = vld [vmem:[%s7133_s1 + $0x74] sm:$0xff]   ;;  %v5945_v35 = vld [vmem:[%s5608_s29 + $0x40] sm:$0xff]  }
  0x43   : > { %5092 = vmatpush3.bf16.msra.mxu1 %v1620_v38  ;;  %v5942_v33 = vld [vmem:[%s5608_s29 + $0x38] sm:$0xff]  }
  0x44   : > { %5093 = vmatprep.subr.bf16.mxu1 %v5450_v39 }
  0x47   : > { %5094 = vmatpush3.bf16.msra.mxu1 %v5450_v39 }
  0x48   : > { %5095 = vmatprep.subr.bf16.mxu1 %v5452_v10 }
  0x49   : > { %5014 = vmatmul.mubr.msk.bf16.gmra.mxu1 %vm533_vm2, %v5660_v32  ;;  %5056 = vmatmul.mubr.msk.bf16.vlgmr.msra.gmra.mxu0 %vm533_vm2, %v1031_v43  ;;  %v5453_v32 = vld [vmem:[%s7133_s1 + $0xa0] sm:$0xff]   ;;  %v2343_v43 = vrot.slane %v5942_v33, 2 }
  0x4a   : > { %5138 = vmatpush3.bf16.msra.mxu0 %v2102_v45  ;;  %5017 = vmatprep.mubr.msk.bf16.mxu1 %vm533_vm2, %v5672_v42  ;;  %v5456_v42 = vld [vmem:[%s7133_s1 + $0x6c] sm:$0xff]  }
  0x4b   : > { %5059 = vmatprep.mubr.msk.bf16.mxu0 %vm533_vm2, %v1033_v48  ;;  %5139 = vmatprep.subr.bf16.mxu0 %v5451_v46  ;;  %v5962_v45 = vld [vmem:[%s5608_s29 + $0x48] sm:$0xff]   ;;  %v1501_v48 = vrot.slane %v4446_v30, 1  ;;  %v5972_v49 = vsel %vm2331_vm4, %v2341_v27, %v2343_v43 }
  0x4c   : > { %5096 = vmatpush3.bf16.msra.mxu1 %v5452_v10  ;;  %v1058_v10 = vrot.slane %v5722_v15, 1 }
  0x4d   : > { %5097 = vmatprep.subr.bf16.mxu1 %v5454_v19 }
  0x4e   : > { %5140 = vmatpush3.bf16.msra.mxu0 %v5451_v46  ;;  %v2345_v46 = vrot.slane %v5945_v35, 2  ;;  %v1061_v23 = vsel %vm1026_vm3, %v1058_v10, %v1060_v8 }
  0x4f   : > { %5141 = vmatprep.subr.bf16.mxu0 %v5453_v32 }
  0x50   : > { %5098 = vmatpush3.bf16.msra.mxu1 %v5454_v19  ;;  %v5969_v19 = vld [vmem:[%s5608_s29 + $0x50] sm:$0xff]  }
  0x51   : > { %5018 = vmatmul.mubr.msk.bf16.gmra.mxu1 %vm533_vm2, %v5689_v54  ;;  %5060 = vmatmul.mubr.msk.bf16.gmra.mxu0 %vm533_vm2, %v1035_v51  ;;  %v5457_v54 = vld [vmem:[%s7133_s1 + $0x90] sm:$0xff]   ;;  %v1851_v51 = vshrl.u32 %v4446_v30, 16 }
  0x52   : > { %5021 = vmatprep.mubr.msk.bf16.mxu1 %vm533_vm2, %v5718_v13  ;;  %5063 = vmatprep.mubr.msk.bf16.mxu0 %vm533_vm2, %v1037_v52  ;;  %v5876_v13 = vld [vmem:[%s7133_s1 + $0xf8] ss:$0 sps:$4 sm:$0x33]   ;;  %v2349_v52 = vrot.slane %v5969_v19, 2 }
  0x53   : > { %5142 = vmatpush3.bf16.msra.mxu0 %v5453_v32  ;;  %5099 = vmatprep.subr.bf16.mxu1 %v5456_v42  ;;  %v2347_v32 = vrot.slane %v5962_v45, 2 }
  0x54   : > { %5143 = vmatprep.subr.bf16.mxu0 %v5455_v53  ;;  %5100 = vmatpush3.bf16.msra.mxu1 %v5456_v42 }
  0x55   : > { %5383 = vmatprep.subr.msk.bf16.mxu1 %vm588_vm0, %v5859_v55  ;;  %v5986_v42 = vsel %vm2331_vm4, %v2345_v46, %v2347_v32 }
  0x57   : > { %5144 = vmatpush3.bf16.msra.mxu0 %v5455_v53  ;;  %v2351_v53 = vrot.slane %v5975_v50, 2 }
  0x58   : > { %5145 = vmatprep.subr.bf16.mxu0 %v5457_v54 }
  0x59   : > { %5022 = vmatmul.mubr.msk.bf16.gmra.mxu1 %vm533_vm2, %v5735_v34  ;;  %5064 = vmatmul.mubr.msk.bf16.gmra.mxu0 %vm533_vm2, %v1039_v58  ;;  %v1043_v34 = vsel %vm1026_vm3, %v1040_v57, %v1042_v60  ;;  %v1854_v57 = vshll.u32 %v4446_v30, 16  ;;  %v5992_v58 = vsel %vm2331_vm4, %v2347_v32, %v2349_v52  ;;  %v5996_v60 = vld [vmem:[%s5608_s29 + $0x68] sm:$0xff]  }
  0x5a   : > { %5025 = vmatprep.mubr.msk.bf16.mxu1 %vm533_vm2, %v5749_v44  ;;  %5067 = vmatprep.mubr.msk.bf16.mxu0 %vm533_vm2, %v1041_v59  ;;  %v1046_v44 = vrot.slane %v5637_v17, 1  ;;  %v1057_v59 = vsel %vm1026_vm3, %v1054_v31, %v1056_v41  ;;  %v1877_v31 = vshrl.u32 %v5909_v12, 16 }
  0x5b   : > { %5146 = vmatpush3.bf16.msra.mxu0 %v5457_v54  ;;  %v1859_v54 = vshrl.u32 %v5900_v2, 16 }
  0x5c   : > { %5384 = vmatprep.subr.msk.bf16.mxu0 %vm588_vm0, %v5876_v13  ;;  %v1047_v3 = vsel %vm1026_vm3, %v1044_v61, %v1046_v44  ;;  %v1049_v5 = vsel %vm1026_vm3, %v1046_v44, %v1048_v63  ;;  %v5999_v61 = vsel %vm2331_vm4, %v2349_v52, %v2351_v53  ;;  %v1862_v44 = vshll.u32 %v5900_v2, 16 }
  0x5d   : > { %v1504_v63 = vrot.slane %v5904_v4, 1 }
  0x61   : > { %5026 = vmatmul.mubr.msk.bf16.gmra.mxu1 %vm533_vm2, %v5770_v1  ;;  %5068 = vmatmul.mubr.msk.bf16.gmra.mxu0 %vm533_vm2, %v1043_v34  ;;  %v2317_v1 = vld [vmem:[%s5608_s29 + $0x8] sm:$0xc] }
  0x62   : > { %5029 = vmatprep.mubr.msk.bf16.mxu1 %vm533_vm2, %v5637_v17  ;;  %5071 = vmatprep.mubr.msk.bf16.mxu0 %vm533_vm2, %v1045_v62  ;;  %v4530_v6 = vcombine.low %v2317_v1, %v1362_v0  ;;  %v2333_v17 = vrot.slane %v5900_v2, 2  ;;  %v1502_v62 = vrot.slane %v5900_v2, 1  ;;  %v1853_v1 = vrot.slane %v1851_v51, 1 }
  0x63   : > { %v1861_v2 = vrot.slane %v1859_v54, 1  ;;  %v5467_v54 = vld [vmem:[%s7133_s1 + $0xcc] sm:$0xff]  }
  0x64   : > { %v2332_v14 = vrot.slane %v4530_v6, 2  ;;  %v5925_v22 = vsel %vm2331_vm4, %v2333_v17, %v2335_v11  ;;  %v6016_v6 = vld [vmem:[%s5608_s29 + $0x70] sm:$0xff]  }
  0x65   : > { %v2357_v16 = vrot.slane %v6016_v6, 2 }
  0x66   : > { %v5933_v25 = vsel %vm2331_vm4, %v2332_v14, %v2333_v17  ;;  %v1864_v17 = vrot.slane %v1862_v44, 2  ;;  %v1868_v14 = vshrl.u32 %v5904_v4, 16  ;;  %v1506_v4 = vrot.slane %v5909_v12, 1 }
  0x67   : > { %v1889_v44 = vshll.u32 %v5922_v20, 16 }
  0x68   : > { %v1865_v30 = vor.u32 %v1864_v17, %v1861_v2  ;;  %v1507_v51 = vsel %vm1026_vm3, %v1504_v63, %v1506_v4  ;;  %v5473_v2 = vld [vmem:[%s7133_s1 + $0xc4] sm:$0xff]   ;;  %v6087_v17 = vld [vmem:[%s5608_s29 + $0x98] ss:$0 sps:$4 sm:$0x33]  }
  0x69   : > { %5030 = vmatmul.mubr.msk.bf16.gmra.mxu1 %vm533_vm2, %v5640_v18  ;;  %5072 = vmatmul.mubr.msk.bf16.gmra.mxu0 %vm533_vm2, %v1047_v3  ;;  %v2337_v18 = vrot.slane %v5909_v12, 2  ;;  %v2355_v3 = vrot.slane %v5996_v60, 2 }
  0x6a   : > { %5033 = vmatprep.mubr.msk.bf16.mxu1 %vm533_vm2, %v5655_v28  ;;  %5075 = vmatprep.mubr.msk.bf16.mxu0 %vm533_vm2, %v1049_v5  ;;  %v2339_v28 = vrot.slane %v5922_v20, 2  ;;  %v1856_v5 = vrot.slane %v1854_v57, 2 }
  0x6b   : > { %v5936_v26 = vsel %vm2331_vm4, %v2335_v11, %v2337_v18  ;;  %v6022_v11 = vld [vmem:[%s5608_s29 + $0x78] sm:$0xff]  }
  0x6c   : > { %v5949_v38 = vsel %vm2331_vm4, %v2337_v18, %v2339_v28  ;;  %v5952_v39 = vsel %vm2331_vm4, %v2339_v28, %v2341_v27  ;;  %v2359_v18 = vrot.slane %v6022_v11, 2  ;;  %v1503_v28 = vsel %vm1026_vm3, %v1501_v48, %v1502_v62 }
  0x6d   : > { %v6034_v27 = vsel %vm2331_vm4, %v2355_v3, %v2357_v16  ;;  %v1857_v8 = vor.u32 %v1856_v5, %v1853_v1  ;;  %v1873_v48 = vrot.slane %v1871_v21, 2  ;;  %v6081_v1 = vld [vmem:[%s5608_s29 + $0x90] sm:$0xff]   ;;  %v1891_v21 = vrot.slane %v1889_v44, 2 }
  0x6f   : > { %v1866_v52 = vsel %vm1849_vm5, %v1857_v8, %v1865_v30 }
  0x71   : > { %5034 = vmatmul.mubr.msk.bf16.gmra.mxu1 %vm533_vm2, %v5668_v40  ;;  %5076 = vmatmul.mubr.msk.bf16.gmra.mxu0 %vm533_vm2, %v1051_v29  ;;  %v5978_v40 = vsel %vm2331_vm4, %v2343_v43, %v2345_v46  ;;  %v6037_v29 = vsel %vm2331_vm4, %v2357_v16, %v2359_v18  ;;  %v1505_v43 = vsel %vm1026_vm3, %v1502_v62, %v1504_v63  ;;  %v1870_v46 = vrot.slane %v1868_v14, 1 }
  0x72   : > { %5037 = vmatprep.mubr.msk.bf16.mxu1 %vm533_vm2, %v5677_v47  ;;  %5079 = vmatprep.mubr.msk.bf16.mxu0 %vm533_vm2, %v1053_v36  ;;  %v5983_v47 = vld [vmem:[%s5608_s29 + $0x60] sm:$0xff]   ;;  %v1886_v62 = vshrl.u32 %v5922_v20, 16  ;;  %v1510_v63 = vrot.slane %v5930_v24, 1  ;;  %v2365_v16 = vrot.slane %v6081_v1, 2 }
  0x73   : > { %v2353_v34 = vrot.slane %v5983_v47, 2  ;;  %v6046_v36 = vld [vmem:[%s5608_s29 + $0x80] sm:$0xff]  }
  0x75   : > { %v6009_v0 = vsel %vm2331_vm4, %v2351_v53, %v2353_v34 }
  0x79   : > { %5038 = vmatmul.mubr.msk.bf16.gmra.mxu1 %vm533_vm2, %v5714_v7  ;;  %5080 = vmatmul.mubr.msk.bf16.gmra.mxu0 %vm533_vm2, %v1055_v56  ;;  %v6019_v7 = vsel %vm2331_vm4, %v2353_v34, %v2355_v3  ;;  %v1879_v56 = vrot.slane %v1877_v31, 1  ;;  %v1508_v34 = vrot.slane %v5922_v20, 1  ;;  %v1895_v3 = vshrl.u32 %v5930_v24, 16 }
  0x7a   : > { %5041 = vmatprep.mubr.msk.bf16.mxu1 %vm533_vm2, %v5722_v15  ;;  %5083 = vmatprep.mubr.msk.bf16.mxu0 %vm533_vm2, %v1057_v59  ;;  %v1059_v15 = vsel %vm1026_vm3, %v1056_v41, %v1058_v10  ;;  %v1880_v41 = vshll.u32 %v5909_v12, 16  ;;  %v6051_v10 = vld [vmem:[%s5608_s29 + $0x88] sm:$0xff]   ;;  %v2451_v12 = vsel %vm588_vm0, %v5859_v55, 0  ;;  %v1874_v55 = vor.u32 %v1873_v48, %v1870_v46 }
  0x7b   : > { %v2363_v32 = vrot.slane %v6051_v10, 2  ;;  %v1509_v14 = vsel %vm1026_vm3, %v1506_v4, %v1508_v34  ;;  %v2925_v20 = vsel %vm588_vm0, %v5876_v13, 0  ;;  %v5469_v4 = vld [vmem:[%s7133_s1 + $0xf0] sm:$0xff]   ;;  %v1512_v46 = vrot.slane %v5942_v33, 1 }
  0x7c   : > { %v1882_v57 = vrot.slane %v1880_v41, 2  ;;  %v1904_v41 = vshrl.u32 %v5942_v33, 16 }
  0x7d   : > { %v6100_v31 = vsel %vm2331_vm4, %v2363_v32, %v2365_v16 }
  0x7e   : > { %v1883_v5 = vor.u32 %v1882_v57, %v1879_v56  ;;  %v5474_v56 = vld [vmem:[%s7133_s1 + $0xe8] sm:$0xff]   ;;  %v1906_v57 = vrot.slane %v1904_v41, 1 }
  0x80   : > { %v1884_v13 = vsel %vm1849_vm5, %v1874_v55, %v1883_v5 }
  0x81   : > { %5042 = vmatmul.mubr.msk.bf16.gmra.mxu1 %vm533_vm2, %v5742_v37  ;;  %5084 = vmatmul.mubr.msk.bf16.gmra.mxu0 %vm533_vm2, %v1059_v15  ;;  %v2361_v37 = vrot.slane %v6046_v36, 2  ;;  %v1875_v15 = vsel %vm1849_vm5, %v1865_v30, %v1874_v55 }
  0x82   : > { %5087 = vmatprep.mubr.msk.bf16.mxu0 %vm533_vm2, %v1061_v23  ;;  %5101 = vmatprep.mubr.msk.bf16.mxu1 %vm533_vm2, %v1503_v28  ;;  %v1511_v23 = vsel %vm1026_vm3, %v1508_v34, %v1510_v63  ;;  %v1897_v28 = vrot.slane %v1895_v3, 1  ;;  %v5485_v3 = vld [vmem:[%s7133_s1 + $0xb4] sm:$0xff]  }
  0x83   : > { %v6059_v53 = vsel %vm2331_vm4, %v2359_v18, %v2361_v37  ;;  %v6067_v59 = vsel %vm2331_vm4, %v2361_v37, %v2363_v32  ;;  %v2367_v18 = vrot.slane %v6087_v17, 2  ;;  %v1907_v37 = vshll.u32 %v5942_v33, 16 }
  0x84   : > { %v1514_v32 = vrot.slane %v5945_v35, 1  ;;  %v1513_v33 = vsel %vm1026_vm3, %v1510_v63, %v1512_v46  ;;  %v5480_v63 = vld [vmem:[%s7133_s1 + $0xe0] sm:$0xff]  }
  0x85   : > { %v6104_v30 = vsel %vm2331_vm4, %v2365_v16, %v2367_v18  ;;  %v1925_v16 = vshll.u32 %v5962_v45, 16  ;;  %v1931_v18 = vshrl.u32 %v5969_v19, 16 }
  0x86   : > { %v1515_v55 = vsel %vm1026_vm3, %v1512_v46, %v1514_v32 }
  0x89   : > { %5088 = vmatmul.mubr.msk.bf16.gmra.mxu0 %vm533_vm2, %v5815_v9  ;;  %5102 = vmatmul.mubr.msk.bf16.vlgmr.msra.gmra.mxu1 %vm533_vm2, %v1505_v43  ;;  %v1898_v9 = vshll.u32 %v5930_v24, 16  ;;  %v1888_v24 = vrot.slane %v1886_v62, 1  ;;  %v5479_v43 = vld [vmem:[%s7133_s1 + $0xbc] sm:$0xff]  }
  0x8a   : > { %5105 = vmatprep.mubr.msk.bf16.mxu1 %vm533_vm2, %v1507_v51  ;;  %5147 = vmatprep.mubr.msk.bf16.mxu0 %vm533_vm2, %v1866_v52  ;;  %v1913_v52 = vshrl.u32 %v5945_v35, 16 }
  0x8b   : > { %5184 = vmatpush3.bf16.msra.mxu1 %v2451_v12  ;;  %v1900_v8 = vrot.slane %v1898_v9, 2  ;;  %v1892_v48 = vor.u32 %v1891_v21, %v1888_v24  ;;  %v1916_v12 = vshll.u32 %v5945_v35, 16  ;;  %v1516_v9 = vrot.slane %v5962_v45, 1  ;;  %v3622_v24 = vld [vmem:[%s5608_s29 + $0x10] sm:$0x8] }
  0x8c   : > { %5185 = vmatprep.subr.bf16.mxu1 %v5467_v54  ;;  %v1915_v44 = vrot.slane %v1913_v52, 1 }
  0x8d   : > { %v1901_v51 = vor.u32 %v1900_v8, %v1897_v28  ;;  %v1893_v34 = vsel %vm1849_vm5, %v1883_v5, %v1892_v48  ;;  %v1918_v35 = vrot.slane %v1916_v12, 2  ;;  %v6152_v28 = vld [vmem:[%s5608_s29 + $0x18] sm:$0xff]   ;;  %v1933_v12 = vrot.slane %v1931_v18, 1 }
  0x8f   : > { %5186 = vmatpush3.bf16.msra.mxu1 %v5467_v54  ;;  %v1909_v54 = vrot.slane %v1907_v37, 2  ;;  %v1902_v62 = vsel %vm1849_vm5, %v1892_v48, %v1901_v51  ;;  %v1919_v21 = vor.u32 %v1918_v35, %v1915_v44  ;;  %v1927_v48 = vrot.slane %v1925_v16, 2 }
  0x90   : > { %5187 = vmatprep.subr.bf16.mxu1 %v5473_v2  ;;  %v1943_v44 = vshll.u32 %v5975_v50, 16 }
  0x91   : > { %5106 = vmatmul.mubr.msk.bf16.gmra.mxu1 %vm533_vm2, %v1509_v14  ;;  %5148 = vmatmul.mubr.msk.bf16.vlgmr.msra.gmra.mxu0 %vm533_vm2, %v1875_v15  ;;  %v1910_v5 = vor.u32 %v1909_v54, %v1906_v57  ;;  %v6139_v14 = vld [vmem:[%s7133_s1 + $0x11c] ss:$0 sps:$4 sm:$0x33]   ;;  %v6146_v15 = vld [vmem:[%s5608_s29 + $0x14] sm:$0xf] }
  0x92   : > { %5230 = vmatpush3.bf16.msra.mxu0 %v2925_v20  ;;  %5109 = vmatprep.mubr.msk.bf16.mxu1 %vm533_vm2, %v1511_v23  ;;  %v1922_v20 = vshrl.u32 %v5962_v45, 16  ;;  %v1934_v23 = vshll.u32 %v5969_v19, 16  ;;  %v4647_v8 = vcombine.low %v3622_v24, %v6146_v15  ;;  %v5486_v45 = vld [vmem:[%s7133_s1 + $0xd8] sm:$0xff]   ;;  %v6175_v57 = vld [vmem:[%s7133_s1 + $0x140] ss:$0 sps:$4 sm:$0x33]  }
  0x93   : > { %5151 = vmatprep.mubr.msk.bf16.mxu0 %vm533_vm2, %v1884_v13  ;;  %5231 = vmatprep.subr.bf16.mxu0 %v5469_v4  ;;  %v6160_v13 = vld [vmem:[%s5608_s29 + $0x20] sm:$0xff]   ;;  %v1911_v41 = vsel %vm1849_vm5, %v1901_v51, %v1910_v5  ;;  %v1920_v52 = vsel %vm1849_vm5, %v1910_v5, %v1919_v21  ;;  %v6196_v5 = vld [vmem:[%s5608_s29 + $0x30] sm:$0xff]  }
  0x94   : > { %5188 = vmatpush3.bf16.msra.mxu1 %v5473_v2  ;;  %v1518_v2 = vrot.slane %v5969_v19, 1  ;;  %v3637_v19 = vrot.slane %v4647_v8, 3  ;;  %v1924_v46 = vrot.slane %v1922_v20, 1 }
  0x95   : > { %5189 = vmatprep.subr.bf16.mxu1 %v5479_v43 }
  0x96   : > { %5232 = vmatpush3.bf16.msra.mxu0 %v5469_v4  ;;  %v1517_v4 = vsel %vm1026_vm3, %v1514_v32, %v1516_v9  ;;  %v1519_v37 = vsel %vm1026_vm3, %v1516_v9, %v1518_v2  ;;  %v3640_v32 = vrot.slane %v6160_v13, 3  ;;  %v1952_v9 = vshll.u32 %v5983_v47, 16 }
  0x97   : > { %5233 = vmatprep.subr.bf16.mxu0 %v5474_v56 }
  0x98   : > { %5190 = vmatpush3.bf16.msra.mxu1 %v5479_v43  ;;  %v3638_v43 = vrot.slane %v6152_v28, 3 }
  0x99   : > { %5110 = vmatmul.mubr.msk.bf16.gmra.mxu1 %vm533_vm2, %v1513_v33  ;;  %5152 = vmatmul.mubr.msk.bf16.gmra.mxu0 %vm533_vm2, %v1893_v34  ;;  %v1520_v33 = vrot.slane %v5975_v50, 1  ;;  %v1522_v34 = vrot.slane %v5983_v47, 1 }
  0x9a   : > { %5113 = vmatprep.mubr.msk.bf16.mxu1 %vm533_vm2, %v1515_v55  ;;  %5155 = vmatprep.mubr.msk.bf16.mxu0 %vm533_vm2, %v1902_v62  ;;  %v6170_v51 = vsel %vm3636_vm6, %v3637_v19, %v3638_v43  ;;  %v6178_v54 = vsel %vm3636_vm6, %v3638_v43, %v3640_v32  ;;  %v1928_v55 = vor.u32 %v1927_v48, %v1924_v46  ;;  %v1940_v62 = vshrl.u32 %v5975_v50, 16 }
  0x9b   : > { %5234 = vmatpush3.bf16.msra.mxu0 %v5474_v56  ;;  %5191 = vmatprep.subr.bf16.mxu1 %v5485_v3  ;;  %v1936_v56 = vrot.slane %v1934_v23, 2  ;;  %v1521_v20 = vsel %vm1026_vm3, %v1518_v2, %v1520_v33  ;;  %v1523_v16 = vsel %vm1026_vm3, %v1520_v33, %v1522_v34  ;;  %v1945_v23 = vrot.slane %v1943_v44, 2 }
  0x9c   : > { %5235 = vmatprep.subr.bf16.mxu0 %v5480_v63  ;;  %5192 = vmatpush3.bf16.msra.mxu1 %v5485_v3  ;;  %v1949_v3 = vshrl.u32 %v5983_v47, 16  ;;  %v1929_v50 = vsel %vm1849_vm5, %v1919_v21, %v1928_v55  ;;  %v1942_v18 = vrot.slane %v1940_v62, 1  ;;  %v3644_v47 = vrot.slane %v6196_v5, 3 }
  0x9d   : > { %5385 = vmatprep.subr.msk.bf16.mxu1 %vm588_vm0, %v6139_v14  ;;  %v1937_v35 = vor.u32 %v1936_v56, %v1933_v12  ;;  %v1524_v21 = vrot.slane %v5996_v60, 1  ;;  %v1958_v43 = vshrl.u32 %v5996_v60, 16  ;;  %v1961_v46 = vshll.u32 %v5996_v60, 16  ;;  %v6221_v12 = vld [vmem:[%s5608_s29 + $0x38] sm:$0xff]   ;;  %v6224_v56 = vld [vmem:[%s5608_s29 + $0x40] sm:$0xff]  }
  0x9e   : > { %v1946_v19 = vor.u32 %v1945_v23, %v1942_v18  ;;  %v3646_v62 = vrot.slane %v6221_v12, 3  ;;  %v3648_v60 = vrot.slane %v6224_v56, 3  ;;  %v1976_v23 = vshrl.u32 %v6022_v11, 16 }
  0x9f   : > { %5236 = vmatpush3.bf16.msra.mxu0 %v5480_v63  ;;  %v6191_v63 = vld [vmem:[%s5608_s29 + $0x28] sm:$0xff]   ;;  %v1938_v8 = vsel %vm1849_vm5, %v1928_v55, %v1937_v35  ;;  %v1525_v33 = vsel %vm1026_vm3, %v1522_v34, %v1524_v21 }
  0xa0   : > { %5237 = vmatprep.subr.bf16.mxu0 %v5486_v45  ;;  %v3642_v24 = vrot.slane %v6191_v63, 3  ;;  %v1947_v44 = vsel %vm1849_vm5, %v1937_v35, %v1946_v19  ;;  %v6236_v34 = vsel %vm3636_vm6, %v3646_v62, %v3648_v60  ;;  %v1528_v35 = vrot.slane %v6022_v11, 1 }
  0xa1   : > { %5114 = vmatmul.mubr.msk.bf16.gmra.mxu1 %vm533_vm2, %v1517_v4  ;;  %5156 = vmatmul.mubr.msk.bf16.gmra.mxu0 %vm533_vm2, %v1911_v41  ;;  %v1951_v4 = vrot.slane %v1949_v3, 1  ;;  %v1960_v3 = vrot.slane %v1958_v43, 1 }
  0xa2   : > { %5117 = vmatprep.mubr.msk.bf16.mxu1 %vm533_vm2, %v1519_v37  ;;  %5159 = vmatprep.mubr.msk.bf16.mxu0 %vm533_vm2, %v1920_v52  ;;  %v6205_v41 = vsel %vm3636_vm6, %v3640_v32, %v3642_v24  ;;  %v6208_v2 = vsel %vm3636_vm6, %v3642_v24, %v3644_v47  ;;  %v1526_v37 = vrot.slane %v6016_v6, 1  ;;  %v1967_v32 = vshrl.u32 %v6016_v6, 16 }
  0xa3   : > { %5238 = vmatpush3.bf16.msra.mxu0 %v5486_v45  ;;  %v1954_v45 = vrot.slane %v1952_v9, 2  ;;  %v1970_v52 = vshll.u32 %v6016_v6, 16  ;;  %v1963_v9 = vrot.slane %v1961_v46, 2  ;;  %v6233_v24 = vsel %vm3636_vm6, %v3644_v47, %v3646_v62 }
  0xa4   : > { %5386 = vmatprep.subr.msk.bf16.mxu0 %vm588_vm0, %v6175_v57  ;;  %v1527_v55 = vsel %vm1026_vm3, %v1524_v21, %v1526_v37  ;;  %v1979_v47 = vshll.u32 %v6022_v11, 16  ;;  %v6249_v21 = vld [vmem:[%s5608_s29 + $0x48] sm:$0xff]   ;;  %v1529_v43 = vsel %vm1026_vm3, %v1526_v37, %v1528_v35 }
  0xa5   : > { %v1955_v48 = vor.u32 %v1954_v45, %v1951_v4  ;;  %v1972_v6 = vrot.slane %v1970_v52, 2  ;;  %v1964_v18 = vor.u32 %v1963_v9, %v1960_v3  ;;  %v1985_v4 = vshrl.u32 %v6046_v36, 16 }
  0xa6   : > { %v1988_v45 = vshll.u32 %v6046_v36, 16 }
  0xa7   : > { %v1965_v52 = vsel %vm1849_vm5, %v1955_v48, %v1964_v18 }
  0xa9   : > { %5118 = vmatmul.mubr.msk.bf16.gmra.mxu1 %vm533_vm2, %v1521_v20  ;;  %5160 = vmatmul.mubr.msk.bf16.gmra.mxu0 %vm533_vm2, %v1929_v50  ;;  %v1956_v20 = vsel %vm1849_vm5, %v1946_v19, %v1955_v48  ;;  %v1530_v50 = vrot.slane %v6046_v36, 1  ;;  %v6252_v19 = vld [vmem:[%s5608_s29 + $0x50] sm:$0xff]   ;;  %v1990_v36 = vrot.slane %v1988_v45, 2  ;;  %v1532_v48 = vrot.slane %v6051_v10, 1 }
  0xaa   : > { %5121 = vmatprep.mubr.msk.bf16.mxu1 %vm533_vm2, %v1523_v16  ;;  %5163 = vmatprep.mubr.msk.bf16.mxu0 %vm533_vm2, %v1938_v8  ;;  %v1969_v16 = vrot.slane %v1967_v32, 1  ;;  %v3650_v32 = vrot.slane %v6249_v21, 3  ;;  %v7136_v11 = vrot.slane %v6252_v19, 3 }
  0xab   : > { %v1531_v46 = vsel %vm1026_vm3, %v1528_v35, %v1530_v50  ;;  %v2003_v35 = vshrl.u32 %v6081_v1, 16 }
  0xac   : > { %v1973_v8 = vor.u32 %v1972_v6, %v1969_v16  ;;  %v6261_v3 = vsel %vm3636_vm6, %v3648_v60, %v3650_v32  ;;  %v6266_v37 = vsel %vm3636_vm6, %v3650_v32, %v7136_v11  ;;  %v1994_v60 = vshrl.u32 %v6051_v10, 16 }
  0xad   : > { %7145 = vst [vmem:[#allocation2_spill] sm:$0xff] %v6266_v37  ;;  %v1534_v16 = vrot.slane %v6081_v1, 1 }
  0xae   : > { %v1974_v62 = vsel %vm1849_vm5, %v1964_v18, %v1973_v8  ;;  %v2006_v18 = vshll.u32 %v6081_v1, 16  ;;  %v1996_v45 = vrot.slane %v1994_v60, 1 }
  0xb1   : > { %5122 = vmatmul.mubr.msk.bf16.gmra.mxu1 %vm533_vm2, %v1525_v33  ;;  %5164 = vmatmul.mubr.msk.bf16.gmra.mxu0 %vm533_vm2, %v1947_v44  ;;  %v1978_v33 = vrot.slane %v1976_v23, 1  ;;  %v1987_v44 = vrot.slane %v1985_v4, 1  ;;  %v1533_v23 = vsel %vm1026_vm3, %v1530_v50, %v1532_v48  ;;  %v5484_v4 = vld [vmem:[%s5608_s29 + $0x98] ss:$0 sps:$4 sm:$0x11]  }
  0xb2   : > { %5125 = vmatprep.mubr.msk.bf16.mxu1 %vm533_vm2, %v1527_v55  ;;  %5167 = vmatprep.mubr.msk.bf16.mxu0 %vm533_vm2, %v1956_v20  ;;  %v1981_v55 = vrot.slane %v1979_v47, 2  ;;  %v1997_v20 = vshll.u32 %v6051_v10, 16  ;;  %v2005_v10 = vrot.slane %v2003_v35, 1  ;;  %v1536_v1 = vrot.slane %v5484_v4, 1 }
  0xb3   : > { %v1991_v6 = vor.u32 %v1990_v36, %v1987_v44 }
  0xb4   : > { %v1982_v9 = vor.u32 %v1981_v55, %v1978_v33  ;;  %v2015_v33 = vshll.u32 %v6087_v17, 16  ;;  %v1537_v44 = vsel %vm1026_vm3, %v1534_v16, %v1536_v1 }
  0xb6   : > { %v1983_v47 = vsel %vm1849_vm5, %v1973_v8, %v1982_v9  ;;  %v1992_v32 = vsel %vm1849_vm5, %v1982_v9, %v1991_v6  ;;  %v2012_v8 = vshrl.u32 %v6087_v17, 16  ;;  %v2017_v9 = vrot.slane %v2015_v33, 2 }
  0xb9   : > { %5126 = vmatmul.mubr.msk.bf16.gmra.mxu1 %vm533_vm2, %v1529_v43  ;;  %5168 = vmatmul.mubr.msk.bf16.gmra.mxu0 %vm533_vm2, %v1965_v52  ;;  %v1999_v43 = vrot.slane %v1997_v20, 2  ;;  %v2008_v52 = vrot.slane %v2006_v18, 2 }
  0xba   : > { %5129 = vmatprep.mubr.msk.bf16.mxu1 %vm533_vm2, %v1531_v46  ;;  %5171 = vmatprep.mubr.msk.bf16.mxu0 %vm533_vm2, %v1974_v62  ;;  %v1535_v46 = vsel %vm1026_vm3, %v1532_v48, %v1534_v16  ;;  %v2666_v62 = vld [vmem:[%s5608_s29 + $0x10] sm:$0xc]  ;;  %v2014_v48 = vrot.slane %v2012_v8, 1  ;;  %v2817_v8 = vrot.slane %v6224_v56, 2 }
  0xbb   : > { %v2000_v50 = vor.u32 %v1999_v43, %v1996_v45  ;;  %v2009_v55 = vor.u32 %v2008_v52, %v2005_v10  ;;  %v6294_v20 = vcombine.low %v2666_v62, %v6146_v15  ;;  %v3407_v15 = vsel %vm588_vm0, %v6139_v14, 0  ;;  %v5502_v14 = vld [vmem:[%s7133_s1 + $0x10c] sm:$0xff]   ;;  %v5508_v43 = vld [vmem:[%s7133_s1 + $0x104] sm:$0xff]  }
  0xbc   : > { %v2018_v17 = vor.u32 %v2017_v9, %v2014_v48  ;;  %v5509_v52 = vld [vmem:[%s7133_s1 + $0x128] sm:$0xff]   ;;  %v2819_v62 = vrot.slane %v6249_v21, 2 }
  0xbd   : > { %v2001_v36 = vsel %vm1849_vm5, %v1991_v6, %v2000_v50  ;;  %v2010_v60 = vsel %vm1849_vm5, %v2000_v50, %v2009_v55  ;;  %v2806_v16 = vrot.slane %v6294_v20, 2  ;;  %v2807_v6 = vrot.slane %v6152_v28, 2 }
  0xbe   : > { %v2019_v35 = vsel %vm1849_vm5, %v2009_v55, %v2018_v17  ;;  %v6380_v17 = vld [vmem:[%s5608_s29 + $0x58] sm:$0xff]  }
  0xbf   : > { %v2808_v18 = vsel %vm2331_vm4, %v2806_v16, %v2807_v6 }
  0xc1   : > { %5130 = vmatmul.mubr.msk.bf16.gmra.mxu1 %vm533_vm2, %v1533_v23  ;;  %5172 = vmatmul.mubr.msk.bf16.gmra.mxu0 %vm533_vm2, %v1983_v47  ;;  %v5496_v23 = vld [vmem:[%s7133_s1 + $0x114] sm:$0xff]   ;;  %v2811_v47 = vrot.slane %v6191_v63, 2 }
  0xc2   : > { %5133 = vmatprep.mubr.msk.bf16.mxu1 %vm533_vm2, %v1535_v46  ;;  %5175 = vmatprep.mubr.msk.bf16.mxu0 %vm533_vm2, %v1992_v32  ;;  %v2815_v46 = vrot.slane %v6221_v12, 2 }
  0xc9   : > { %5134 = vmatmul.mubr.msk.bf16.gmra.mxu1 %vm533_vm2, %v1537_v44  ;;  %5176 = vmatmul.mubr.msk.bf16.gmra.mxu0 %vm533_vm2, %v2001_v36  ;;  %v2818_v36 = vsel %vm2331_vm4, %v2815_v46, %v2817_v8 }
  0xca   : > { %5179 = vmatprep.mubr.msk.bf16.mxu0 %vm533_vm2, %v2010_v60  ;;  %5193 = vmatprep.mubr.msk.bf16.mxu1 %vm533_vm2, %v5933_v25  ;;  %v2809_v25 = vrot.slane %v6160_v13, 2  ;;  %v2820_v60 = vsel %vm2331_vm4, %v2817_v8, %v2819_v62 }
  0xcc   : > { %v2810_v4 = vsel %vm2331_vm4, %v2807_v6, %v2809_v25  ;;  %v2812_v45 = vsel %vm2331_vm4, %v2809_v25, %v2811_v47 }
  0xd1   : > { %5180 = vmatmul.mubr.msk.bf16.gmra.mxu0 %vm533_vm2, %v2019_v35  ;;  %5194 = vmatmul.mubr.msk.bf16.vlgmr.msra.gmra.mxu1 %vm533_vm2, %v5925_v22  ;;  %v3756_v22 = vsel %vm588_vm0, %v6175_v57, 0  ;;  %v2813_v57 = vrot.slane %v6196_v5, 2  ;;  %v2821_v35 = vrot.slane %v6252_v19, 2 }
  0xd2   : > { %5197 = vmatprep.mubr.msk.bf16.mxu1 %vm533_vm2, %v5936_v26  ;;  %5239 = vmatprep.mubr.msk.bf16.mxu0 %vm533_vm2, %v2808_v18  ;;  %v5498_v26 = vld [vmem:[%s7133_s1 + $0x138] sm:$0xff]  }
  0xd3   : > { %5276 = vmatpush3.bf16.msra.mxu1 %v3407_v15  ;;  %v2814_v32 = vsel %vm2331_vm4, %v2811_v47, %v2813_v57  ;;  %v2816_v10 = vsel %vm2331_vm4, %v2813_v57, %v2815_v46  ;;  %v2822_v47 = vsel %vm2331_vm4, %v2819_v62, %v2821_v35 }
  0xd4   : > { %5277 = vmatprep.subr.bf16.mxu1 %v5496_v23 }
  0xd7   : > { %5278 = vmatpush3.bf16.msra.mxu1 %v5496_v23  ;;  %v2823_v23 = vrot.slane %v6380_v17, 2 }
  0xd8   : > { %5279 = vmatprep.subr.bf16.mxu1 %v5502_v14 }
  0xd9   : > { %5198 = vmatmul.mubr.msk.bf16.gmra.mxu1 %vm533_vm2, %v5949_v38  ;;  %5240 = vmatmul.mubr.msk.bf16.vlgmr.msra.gmra.mxu0 %vm533_vm2, %v2810_v4  ;;  %v5503_v38 = vld [vmem:[%s7133_s1 + $0x130] sm:$0xff]  }
  0xda   : > { %5322 = vmatpush3.bf16.msra.mxu0 %v3756_v22  ;;  %5201 = vmatprep.mubr.msk.bf16.mxu1 %vm533_vm2, %v5952_v39  ;;  %v5514_v39 = vld [vmem:[%s7133_s1 + $0xfc] sm:$0xff]   ;;  %v2824_v22 = vsel %vm2331_vm4, %v2821_v35, %v2823_v23 }
  0xdb   : > { %5243 = vmatprep.mubr.msk.bf16.mxu0 %vm533_vm2, %v2812_v45  ;;  %5323 = vmatprep.subr.bf16.mxu0 %v5498_v26 }
  0xdc   : > { %5280 = vmatpush3.bf16.msra.mxu1 %v5502_v14  ;;  %v6404_v14 = vld [vmem:[%s5608_s29 + $0x60] sm:$0xff]  }
  0xdd   : > { %5281 = vmatprep.subr.bf16.mxu1 %v5508_v43  ;;  %v2825_v57 = vrot.slane %v6404_v14, 2 }
  0xde   : > { %5324 = vmatpush3.bf16.msra.mxu0 %v5498_v26  ;;  %v6412_v26 = vld [vmem:[%s5608_s29 + $0x68] sm:$0xff]  }
  0xdf   : > { %5325 = vmatprep.subr.bf16.mxu0 %v5503_v38 }
  0xe0   : > { %5282 = vmatpush3.bf16.msra.mxu1 %v5508_v43 }
  0xe1   : > { %v6350_v1 = vpop.f32.mrf.mxu0  ;;  %v6352_v50 = vpop.f32.mrf.mxu1  ;;  %5202 = vmatmul.mubr.msk.bf16.gmra.mxu1 %vm533_vm2, %v5972_v49  ;;  %5244 = vmatmul.mubr.msk.bf16.gmra.mxu0 %vm533_vm2, %v2814_v32  ;;  %v5515_v49 = vld [vmem:[%s7133_s1 + $0x120] sm:$0xff]   ;;  %v2827_v32 = vrot.slane %v6412_v26, 2 }
  0xe2   : > { %5205 = vmatprep.mubr.msk.bf16.mxu1 %vm533_vm2, %v5978_v40  ;;  %5247 = vmatprep.mubr.msk.bf16.mxu0 %vm533_vm2, %v2816_v10 }
  0xe3   : > { %v6361_v33 = vpop.f32.mrf.mxu0  ;;  %v6363_v55 = vpop.f32.mrf.mxu1  ;;  %5326 = vmatpush3.bf16.msra.mxu0 %v5503_v38  ;;  %5283 = vmatprep.subr.bf16.mxu1 %v5514_v39  ;;  %v2828_v62 = vsel %vm2331_vm4, %v2825_v57, %v2827_v32 }
  0xe4   : > { %5327 = vmatprep.subr.bf16.mxu0 %v5509_v52  ;;  %5284 = vmatpush3.bf16.msra.mxu1 %v5514_v39 }
  0xe5   : > { %v6369_v40 = vpop.f32.mrf.mxu0  ;;  %v6371_v44 = vpop.f32.mrf.mxu1 }
  0xe6   : > { %7146 = vst [vmem:[#allocation3_spill] sm:$0xff] %v6371_v44 }
  0xe7   : > { %v6374_v48 = vpop.f32.mrf.mxu0  ;;  %v6376_v9 = vpop.f32.mrf.mxu1  ;;  %5328 = vmatpush3.bf16.msra.mxu0 %v5509_v52  ;;  %v6436_v52 = vld [vmem:[%s5608_s29 + $0x70] sm:$0xff]  }
  0xe8   : > { %7147 = vst [vmem:[#allocation4_spill] sm:$0xff] %v6376_v9  ;;  %5329 = vmatprep.subr.bf16.mxu0 %v5515_v49  ;;  %v2829_v35 = vrot.slane %v6436_v52, 2 }
  0xe9   : > { %v6382_v16 = vpop.f32.mrf.mxu0  ;;  %v6384_v6 = vpop.f32.mrf.mxu1  ;;  %5206 = vmatmul.mubr.msk.bf16.gmra.mxu1 %vm533_vm2, %v5986_v42  ;;  %5248 = vmatmul.mubr.msk.bf16.gmra.mxu0 %vm533_vm2, %v2818_v36 }
  0xea   : > { %7148 = vst [vmem:[#allocation5_spill] sm:$0xff] %v6384_v6  ;;  %5209 = vmatprep.mubr.msk.bf16.mxu1 %vm533_vm2, %v5992_v58  ;;  %5251 = vmatprep.mubr.msk.bf16.mxu0 %vm533_vm2, %v2820_v60 }
  0xeb   : > { %v6393_v18 = vpop.f32.mrf.mxu0  ;;  %v6395_v15 = vpop.f32.mrf.mxu1  ;;  %5330 = vmatpush3.bf16.msra.mxu0 %v5515_v49  ;;  %v6444_v49 = vld [vmem:[%s5608_s29 + $0x78] sm:$0xff]  }
  0xec   : > { %7149 = vst [vmem:[#allocation6_spill] sm:$0xff] %v6395_v15  ;;  %7156 = vst [vmem:[#allocation13_spill] sm:$0xff] %v6444_v49  ;;  %v6505_v15 = vld [vmem:[%s5608_s29 + $0x98] sm:$0xff]  }
  0xed   : > { %v6398_v25 = vpop.f32.mrf.mxu0  ;;  %v6400_v42 = vpop.f32.mrf.mxu1  ;;  %7163 = vst [vmem:[#allocation20_spill] sm:$0xff] %v6505_v15 }
  0xee   : > { %7150 = vst [vmem:[#allocation7_spill] sm:$0xff] %v6400_v42 }
  0xef   : > { %v6406_v58 = vpop.f32.mrf.mxu0  ;;  %v6408_v4 = vpop.f32.mrf.mxu1 }
  0xf0   : > { %7151 = vst [vmem:[#allocation8_spill] sm:$0xff] %v6408_v4 }
  0xf1   : > { %v6414_v45 = vpop.f32.mrf.mxu0  ;;  %v6416_v43 = vpop.f32.mrf.mxu1  ;;  %5210 = vmatmul.mubr.msk.bf16.gmra.mxu1 %vm533_vm2, %v5999_v61  ;;  %5252 = vmatmul.mubr.msk.bf16.gmra.mxu0 %vm533_vm2, %v2822_v47  ;;  %v2826_v61 = vsel %vm2331_vm4, %v2823_v23, %v2825_v57 }
  0xf2   : > { %7152 = vst [vmem:[#allocation9_spill] sm:$0xff] %v6416_v43  ;;  %5213 = vmatprep.mubr.msk.bf16.mxu1 %vm533_vm2, %v6009_v0  ;;  %5255 = vmatprep.mubr.msk.bf16.mxu0 %vm533_vm2, %v2824_v22  ;;  %v2831_v22 = vrot.slane %v6444_v49, 2 }
  0xf3   : > { %v6425_v46 = vpop.f32.mrf.mxu0  ;;  %v6427_v38 = vpop.f32.mrf.mxu1 }
  0xf4   : > { %7153 = vst [vmem:[#allocation10_spill] sm:$0xff] %v6427_v38 }
  0xf5   : > { %v6430_v10 = vpop.f32.mrf.mxu0  ;;  %v6432_v39 = vpop.f32.mrf.mxu1 }
  0xf6   : > { %7154 = vst [vmem:[#allocation11_spill] sm:$0xff] %v6432_v39 }
  0xf7   : > { %v6438_v8 = vpop.f32.mrf.mxu0  ;;  %v6440_v0 = vpop.f32.mrf.mxu1 }
  0xf8   : > { %7155 = vst [vmem:[#allocation12_spill] sm:$0xff] %v6440_v0  ;;  %v2832_v0 = vsel %vm2331_vm4, %v2829_v35, %v2831_v22 }
  0xf9   : > { %v6446_v36 = vpop.f32.mrf.mxu0  ;;  %v6448_v60 = vpop.f32.mrf.mxu1  ;;  %5214 = vmatmul.mubr.msk.bf16.gmra.mxu1 %vm533_vm2, %v6019_v7  ;;  %5256 = vmatmul.mubr.msk.bf16.gmra.mxu0 %vm533_vm2, %v2826_v61  ;;  %v2830_v7 = vsel %vm2331_vm4, %v2827_v32, %v2829_v35  ;;  %v6468_v61 = vld [vmem:[%s5608_s29 + $0x80] sm:$0xff]  }
  0xfa   : > { %7157 = vst [vmem:[#allocation14_spill] sm:$0xff] %v6448_v60  ;;  %5217 = vmatprep.mubr.msk.bf16.mxu1 %vm533_vm2, %v6034_v27  ;;  %5259 = vmatprep.mubr.msk.bf16.mxu0 %vm533_vm2, %v2828_v62  ;;  %7160 = vst [vmem:[#allocation17_spill] sm:$0xff] %v6468_v61  ;;  %v6471_v60 = vld [vmem:[%s5608_s29 + $0x88] sm:$0xff]  }
  0xfb   : > { %v6457_v23 = vpop.f32.mrf.mxu0  ;;  %v6459_v47 = vpop.f32.mrf.mxu1  ;;  %7161 = vst [vmem:[#allocation18_spill] sm:$0xff] %v6471_v60  ;;  %v2835_v35 = vrot.slane %v6471_v60, 2 }
  0xfc   : > { %7158 = vst [vmem:[#allocation15_spill] sm:$0xff] %v6459_v47 }
  0xfd   : > { %v6462_v57 = vpop.f32.mrf.mxu0  ;;  %v6464_v11 = vpop.f32.mrf.mxu1 }
  0xfe   : > { %7159 = vst [vmem:[#allocation16_spill] sm:$0xff] %v6464_v11 }
  0xff   : > { %v6473_v27 = vpop.f32.mrf.mxu0  ;;  %v6475_v62 = vpop.f32.mrf.mxu1 }
 0x100   : > { %7162 = vst [vmem:[#allocation19_spill] sm:$0xff] %v6475_v62  ;;  %v2833_v62 = vrot.slane %v6468_v61, 2  ;;  %v6502_v61 = vld [vmem:[%s5608_s29 + $0x90] sm:$0xff]  }
 0x101   : > { %v6478_v39 = vpop.f32.mrf.mxu0  ;;  %v5011_v47 = vpop.f32.mrf.mxu1  ;;  %5218 = vmatmul.mubr.msk.bf16.gmra.mxu1 %vm533_vm2, %v6037_v29  ;;  %5260 = vmatmul.mubr.msk.bf16.gmra.mxu0 %vm533_vm2, %v2830_v7  ;;  %v3156_v29 = vshrl.u32 %v6294_v20, 16  ;;  %v3159_v7 = vshll.u32 %v6294_v20, 16 }
 0x102   : > { %v878_v32 = vadd.f32 %v5011_v47, %v6350_v1  ;;  %5221 = vmatprep.mubr.msk.bf16.mxu1 %vm533_vm2, %v6059_v53  ;;  %5263 = vmatprep.mubr.msk.bf16.mxu0 %vm533_vm2, %v2832_v0  ;;  %v3164_v1 = vshrl.u32 %v6152_v28, 16  ;;  %v3167_v47 = vshll.u32 %v6152_v28, 16  ;;  %v2834_v42 = vsel %vm2331_vm4, %v2831_v22, %v2833_v62 }
 0x103   : > { %v6489_v11 = vpop.f32.mrf.mxu0  ;;  %v869_v38 = vpop.f32.mrf.mxu1  ;;  %v2836_v60 = vsel %vm2331_vm4, %v2833_v62, %v2835_v35  ;;  %v3158_v6 = vrot.slane %v3156_v29, 2  ;;  %v3161_v28 = vrot.slane %v3159_v7, 3  ;;  %v3176_v22 = vshll.u32 %v6160_v13, 16 }
 0x104   : > { %v870_v53 = vadd.f32 %v869_v38, %v6361_v33  ;;  %v3166_v9 = vrot.slane %v3164_v1, 2  ;;  %v3169_v33 = vrot.slane %v3167_v47, 3 }
 0x105   : > { %v6496_v43 = vpop.f32.mrf.mxu0  ;;  %v5012_v0 = vpop.f32.mrf.mxu1  ;;  %v3162_v29 = vor.u32 %v3161_v28, %v3158_v6  ;;  %v3178_v47 = vrot.slane %v3176_v22, 3 }
 0x106   : > { %v881_v4 = vadd.f32 %v5012_v0, %v6369_v40  ;;  %v3173_v40 = vshrl.u32 %v6160_v13, 16  ;;  %v3170_v7 = vor.u32 %v3169_v33, %v3166_v9  ;;  %v3182_v13 = vshrl.u32 %v6191_v63, 16 }
 0x107   : > { %v6507_v20 = vpop.f32.mrf.mxu0  ;;  %v872_v37 = vpop.f32.mrf.mxu1 }
 0x108   : > { %v873_v38 = vadd.f32 %v872_v37, %v6374_v48  ;;  %v2837_v37 = vrot.slane %v6502_v61, 2  ;;  %v3175_v1 = vrot.slane %v3173_v40, 2 }
 0x109   : > { %v5015_v44 = vpop.f32.mrf.mxu1  ;;  %v5057_v49 = vpop.f32.mrf.mxu0  ;;  %5222 = vmatmul.mubr.msk.bf16.gmra.mxu1 %vm533_vm2, %v6067_v59  ;;  %5264 = vmatmul.mubr.msk.bf16.gmra.mxu0 %vm533_vm2, %v2834_v42  ;;  %v2839_v59 = vrot.slane %v6505_v15, 2 }
 0x10a   : > { %v894_v62 = vadd.f32 %v5015_v44, %v6382_v16  ;;  %v6516_v0 = vadd.f32 %v5057_v49, %v878_v32  ;;  %5225 = vmatprep.mubr.msk.bf16.mxu1 %vm533_vm2, %v6100_v31  ;;  %5267 = vmatprep.mubr.msk.bf16.mxu0 %vm533_vm2, %v2836_v60  ;;  %v3185_v44 = vshll.u32 %v6191_v63, 16  ;;  %v5517_v60 = vld [vmem:[%s5608_s29 + $0xa0] ss:$0 sps:$4 sm:$0x33]   ;;  %v2838_v9 = vsel %vm2331_vm4, %v2835_v35, %v2837_v37 }
 0x10b   : > { %v885_v48 = vpop.f32.mrf.mxu1  ;;  %v1182_v42 = vpop.f32.mrf.mxu0  ;;  %v2840_v63 = vsel %vm2331_vm4, %v2837_v37, %v2839_v59 }
 0x10c   : > { %7164 = vst [vmem:[#allocation21_spill] sm:$0xff] %v6516_v0  ;;  %v886_v16 = vadd.f32 %v885_v48, %v6393_v18  ;;  %v6526_v49 = vadd.f32 %v1182_v42, %v870_v53  ;;  %v3171_v18 = vsel %vm3154_vm7, %v3162_v29, %v3170_v7  ;;  %v3184_v53 = vrot.slane %v3182_v13, 2 }
 0x10d   : > { %v5016_v31 = vpop.f32.mrf.mxu1  ;;  %v5058_v32 = vpop.f32.mrf.mxu0  ;;  %v3187_v33 = vrot.slane %v3185_v44, 3 }
 0x10e   : > { %v897_v0 = vadd.f32 %v5016_v31, %v6398_v25  ;;  %v6530_v15 = vadd.f32 %v5058_v32, %v881_v4  ;;  %v2841_v25 = vrot.slane %v5517_v60, 2  ;;  %v3179_v4 = vor.u32 %v3178_v47, %v3175_v1 }
 0x10f   : > { %v888_v6 = vpop.f32.mrf.mxu1  ;;  %v1185_v28 = vpop.f32.mrf.mxu0  ;;  %v3188_v44 = vor.u32 %v3187_v33, %v3184_v53  ;;  %v3203_v31 = vshll.u32 %v6221_v12, 16 }
 0x110   : > { %v889_v48 = vadd.f32 %v888_v6, %v6406_v58  ;;  %v6536_v42 = vadd.f32 %v1185_v28, %v873_v38  ;;  %v3191_v58 = vshrl.u32 %v6196_v5, 16  ;;  %v3194_v38 = vshll.u32 %v6196_v5, 16 }
 0x111   : > { %v5019_v40 = vpop.f32.mrf.mxu1  ;;  %v5061_v22 = vpop.f32.mrf.mxu0  ;;  %5226 = vmatmul.mubr.msk.bf16.gmra.mxu1 %vm533_vm2, %v6104_v30  ;;  %5268 = vmatmul.mubr.msk.bf16.gmra.mxu0 %vm533_vm2, %v2838_v9  ;;  %v3200_v30 = vshrl.u32 %v6221_v12, 16  ;;  %v2842_v1 = vsel %vm2331_vm4, %v2839_v59, %v2841_v25  ;;  %v3180_v47 = vsel %vm3154_vm7, %v3170_v7, %v3179_v4  ;;  %v3189_v12 = vsel %vm3154_vm7, %v3179_v4, %v3188_v44 }
 0x112   : > { %v910_v35 = vadd.f32 %v5019_v40, %v6414_v45  ;;  %v6542_v37 = vadd.f32 %v5061_v22, %v894_v62  ;;  %5271 = vmatprep.mubr.msk.bf16.mxu0 %vm533_vm2, %v2840_v63  ;;  %5285 = vmatprep.mubr.msk.bf16.mxu1 %vm533_vm2, %v3171_v18  ;;  %v3193_v6 = vrot.slane %v3191_v58, 2  ;;  %v3196_v28 = vrot.slane %v3194_v38, 3 }
 0x113   : > { %v901_v29 = vpop.f32.mrf.mxu1  ;;  %v1198_v13 = vpop.f32.mrf.mxu0  ;;  %v3202_v53 = vrot.slane %v3200_v30, 2  ;;  %v3218_v58 = vshrl.u32 %v6249_v21, 16  ;;  %v3221_v38 = vshll.u32 %v6249_v21, 16 }
 0x114   : > { %v902_v32 = vadd.f32 %v901_v29, %v6425_v46  ;;  %v6551_v45 = vadd.f32 %v1198_v13, %v886_v16  ;;  %v3205_v46 = vrot.slane %v3203_v31, 3 }
 0x115   : > { %v5020_v62 = vpop.f32.mrf.mxu1  ;;  %v5062_v60 = vpop.f32.mrf.mxu0  ;;  %v3223_v21 = vrot.slane %v3221_v38, 3 }
 0x116   : > { %v913_v9 = vadd.f32 %v5020_v62, %v6430_v10  ;;  %v6556_v5 = vadd.f32 %v5062_v60, %v897_v0  ;;  %v3209_v10 = vshrl.u32 %v6224_v56, 16  ;;  %v3212_v0 = vshll.u32 %v6224_v56, 16 }
 0x117   : > { %v904_v63 = vpop.f32.mrf.mxu1  ;;  %v1201_v18 = vpop.f32.mrf.mxu0  ;;  %v3206_v4 = vor.u32 %v3205_v46, %v3202_v53 }
 0x118   : > { %v905_v16 = vadd.f32 %v904_v63, %v6438_v8  ;;  %v6560_v33 = vadd.f32 %v1201_v18, %v889_v48  ;;  %v3197_v8 = vor.u32 %v3196_v28, %v3193_v6  ;;  %v3211_v13 = vrot.slane %v3209_v10, 2 }
 0x119   : > { %v5023_v40 = vpop.f32.mrf.mxu1  ;;  %v5065_v59 = vpop.f32.mrf.mxu0  ;;  %5272 = vmatmul.mubr.msk.bf16.gmra.mxu0 %vm533_vm2, %v2842_v1  ;;  %5286 = vmatmul.mubr.msk.bf16.vlgmr.msra.gmra.mxu1 %vm533_vm2, %v3180_v47  ;;  %v3214_v30 = vrot.slane %v3212_v0, 3  ;;  %v3220_v6 = vrot.slane %v3218_v58, 2  ;;  %v3230_v18 = vshll.u32 %v6252_v19, 16 }
 0x11a   : > { %v926_v7 = vadd.f32 %v5023_v40, %v6446_v36  ;;  %v6567_v22 = vadd.f32 %v5065_v59, %v910_v35  ;;  %5289 = vmatprep.mubr.msk.bf16.mxu1 %vm533_vm2, %v3189_v12  ;;  %5331 = vmatprep.mubr.msk.bf16.mxu0 %vm533_vm2, %v6170_v51  ;;  %v3198_v51 = vsel %vm3154_vm7, %v3188_v44, %v3197_v8 }
 0x11b   : > { %v917_v48 = vpop.f32.mrf.mxu1  ;;  %v1214_v25 = vpop.f32.mrf.mxu0  ;;  %v3207_v47 = vsel %vm3154_vm7, %v3197_v8, %v3206_v4  ;;  %v3224_v46 = vor.u32 %v3223_v21, %v3220_v6  ;;  %v3257_v6 = vshll.u32 %v6412_v26, 16 }
 0x11c   : > { %v918_v29 = vadd.f32 %v917_v48, %v6457_v23  ;;  %v6575_v56 = vadd.f32 %v1214_v25, %v902_v32  ;;  %v3232_v48 = vrot.slane %v3230_v18, 3 }
 0x11d   : > { %v5024_v36 = vpop.f32.mrf.mxu1  ;;  %v5066_v35 = vpop.f32.mrf.mxu0 }
 0x11e   : > { %v929_v31 = vadd.f32 %v5024_v36, %v6462_v57  ;;  %v6578_v62 = vadd.f32 %v5066_v35, %v913_v9  ;;  %v3215_v57 = vor.u32 %v3214_v30, %v3211_v13 }
 0x11f   : > { %v920_v60 = vpop.f32.mrf.mxu1  ;;  %v1217_v1 = vpop.f32.mrf.mxu0 }
 0x120   : > { %v921_v23 = vadd.f32 %v920_v60, %v6473_v27  ;;  %v6583_v32 = vadd.f32 %v1217_v1, %v905_v16  ;;  %v3227_v27 = vshrl.u32 %v6252_v19, 16  ;;  %v3236_v16 = vshrl.u32 %v6380_v17, 16 }
 0x121   : > { %v5027_v28 = vpop.f32.mrf.mxu1  ;;  %v5069_v63 = vpop.f32.mrf.mxu0  ;;  %5290 = vmatmul.mubr.msk.bf16.gmra.mxu1 %vm533_vm2, %v3198_v51  ;;  %5332 = vmatmul.mubr.msk.bf16.vlgmr.msra.gmra.mxu0 %vm533_vm2, %v6178_v54  ;;  %v3239_v54 = vshll.u32 %v6380_v17, 16  ;;  %v3216_v0 = vsel %vm3154_vm7, %v3206_v4, %v3215_v57  ;;  %v3225_v38 = vsel %vm3154_vm7, %v3215_v57, %v3224_v46 }
 0x122   : > { %v942_v44 = vadd.f32 %v5027_v28, %v6478_v39  ;;  %v6589_v9 = vadd.f32 %v5069_v63, %v926_v7  ;;  %5293 = vmatprep.mubr.msk.bf16.mxu1 %vm533_vm2, %v3207_v47  ;;  %5335 = vmatprep.mubr.msk.bf16.mxu0 %vm533_vm2, %v6205_v41  ;;  %v3229_v8 = vrot.slane %v3227_v27, 2  ;;  %v3238_v36 = vrot.slane %v3236_v16, 2 }
 0x123   : > { %v933_v12 = vpop.f32.mrf.mxu1  ;;  %v1230_v53 = vpop.f32.mrf.mxu0  ;;  %v3241_v35 = vrot.slane %v3239_v54, 3  ;;  %v3254_v47 = vshrl.u32 %v6412_v26, 16 }
 0x124   : > { %v934_v39 = vadd.f32 %v933_v12, %v6489_v11  ;;  %v6599_v40 = vadd.f32 %v1230_v53, %v918_v29  ;;  %v3233_v4 = vor.u32 %v3232_v48, %v3229_v8  ;;  %v3259_v53 = vrot.slane %v3257_v6, 3 }
 0x125   : > { %v5028_v59 = vpop.f32.mrf.mxu1  ;;  %v5070_v10 = vpop.f32.mrf.mxu0  ;;  %v3242_v1 = vor.u32 %v3241_v35, %v3238_v36  ;;  %v3256_v12 = vrot.slane %v3254_v47, 2  ;;  %v7166_v35 = vld [vmem:[#allocation3_spill] sm:$0xff] }
 0x126   : > { %v945_v41 = vadd.f32 %v5028_v59, %v6496_v43  ;;  %v6603_v7 = vadd.f32 %v5070_v10, %v929_v31  ;;  %v3245_v31 = vshrl.u32 %v6404_v14, 16  ;;  %v3266_v10 = vshll.u32 %v6436_v52, 16 }
 0x127   : > { %v936_v25 = vpop.f32.mrf.mxu1  ;;  %v1233_v58 = vpop.f32.mrf.mxu0  ;;  %v3243_v18 = vsel %vm3154_vm7, %v3233_v4, %v3242_v1 }
 0x128   : > { %v937_v11 = vadd.f32 %v936_v25, %v6507_v20  ;;  %v6607_v29 = vadd.f32 %v1233_v58, %v921_v23  ;;  %v3248_v20 = vshll.u32 %v6404_v14, 16  ;;  %v3247_v63 = vrot.slane %v3245_v31, 2 }
 0x129   : > { %v5031_v13 = vpop.f32.mrf.mxu1  ;;  %v5073_v30 = vpop.f32.mrf.mxu0  ;;  %5294 = vmatmul.mubr.msk.bf16.gmra.mxu1 %vm533_vm2, %v3216_v0  ;;  %5336 = vmatmul.mubr.msk.bf16.gmra.mxu0 %vm533_vm2, %v6208_v2  ;;  %v3260_v25 = vor.u32 %v3259_v53, %v3256_v12  ;;  %v3654_v58 = vrot.slane %v6380_v17, 3  ;;  %v3268_v31 = vrot.slane %v3266_v10, 3  ;;  %v7170_v53 = vld [vmem:[#allocation2_spill] sm:$0xff] }
 0x12a   : > { %v6612_v43 = vadd.f32 %v5073_v30, %v942_v44  ;;  %5297 = vmatprep.mubr.msk.bf16.mxu1 %vm533_vm2, %v3225_v38  ;;  %5339 = vmatprep.mubr.msk.bf16.mxu0 %vm533_vm2, %v6233_v24  ;;  %v3234_v24 = vsel %vm3154_vm7, %v3224_v46, %v3233_v4  ;;  %v3250_v57 = vrot.slane %v3248_v20, 3  ;;  %v958_v16 = vadd.f32 %v5031_v13, %v6352_v50  ;;  %v7167_v20 = vld [vmem:[#allocation4_spill] sm:$0xff] }
 0x12b   : > { %v949_v51 = vpop.f32.mrf.mxu1  ;;  %v1246_v60 = vpop.f32.mrf.mxu0  ;;  %v3263_v46 = vshrl.u32 %v6436_v52, 16 }
 0x12c   : > { %v6621_v2 = vadd.f32 %v1246_v60, %v934_v39  ;;  %v950_v0 = vadd.f32 %v949_v51, %v6363_v55  ;;  %v3251_v50 = vor.u32 %v3250_v57, %v3247_v63  ;;  %v7169_v57 = vld [vmem:[#allocation5_spill] sm:$0xff] }
 0x12d   : > { %v5032_v21 = vpop.f32.mrf.mxu1  ;;  %v5074_v23 = vpop.f32.mrf.mxu0  ;;  %v3265_v4 = vrot.slane %v3263_v46, 2 }
 0x12e   : > { %v6623_v28 = vadd.f32 %v5074_v23, %v945_v41  ;;  %v3252_v60 = vsel %vm3154_vm7, %v3242_v1, %v3251_v50  ;;  %v3261_v6 = vsel %vm3154_vm7, %v3251_v50, %v3260_v25  ;;  %v7168_v23 = vrot.slane %v6252_v19, 3 }
 0x12f   : > { %v952_v44 = vpop.f32.mrf.mxu1  ;;  %v1249_v27 = vpop.f32.mrf.mxu0  ;;  %v3269_v1 = vor.u32 %v3268_v31, %v3265_v4 }
 0x130   : > { %v6628_v54 = vadd.f32 %v1249_v27, %v937_v11  ;;  %v961_v11 = vadd.f32 %v5032_v21, %v7166_v35  ;;  %v3655_v21 = vsel %vm3636_vm6, %v7168_v23, %v3654_v58  ;;  %v7173_v35 = vld [vmem:[#allocation18_spill] sm:$0xff] }
 0x131   : > { %v5035_v39 = vpop.f32.mrf.mxu1  ;;  %v5077_v59 = vpop.f32.mrf.mxu0  ;;  %5298 = vmatmul.mubr.msk.bf16.gmra.mxu1 %vm533_vm2, %v3234_v24  ;;  %5340 = vmatmul.mubr.msk.bf16.gmra.mxu0 %vm533_vm2, %v6236_v34  ;;  %v7165_v34 = vld [vmem:[#allocation13_spill] sm:$0xff] }
 0x132   : > { %v6636_v41 = vadd.f32 %v5077_v59, %v958_v16  ;;  %5301 = vmatprep.mubr.msk.bf16.mxu1 %vm533_vm2, %v3243_v18  ;;  %5343 = vmatprep.mubr.msk.bf16.mxu0 %vm533_vm2, %v6261_v3  ;;  %v3272_v38 = vshrl.u32 %v7165_v34, 16  ;;  %v3275_v36 = vshll.u32 %v7165_v34, 16  ;;  %v953_v3 = vadd.f32 %v952_v44, %v7167_v20  ;;  %v7171_v59 = vld [vmem:[#allocation6_spill] sm:$0xff] }
 0x133   : > { %v965_v8 = vpop.f32.mrf.mxu1  ;;  %v1262_v48 = vpop.f32.mrf.mxu0  ;;  %v974_v27 = vadd.f32 %v5035_v39, %v7169_v57  ;;  %v3656_v16 = vrot.slane %v6404_v14, 3  ;;  %v7172_v39 = vld [vmem:[#allocation17_spill] sm:$0xff]  ;;  %v3293_v14 = vshll.u32 %v7173_v35, 16 }
 0x134   : > { %v6645_v55 = vadd.f32 %v1262_v48, %v950_v0  ;;  %v3274_v24 = vrot.slane %v3272_v38, 2  ;;  %v3277_v63 = vrot.slane %v3275_v36, 3  ;;  %v966_v19 = vadd.f32 %v965_v8, %v7171_v59  ;;  %v7174_v8 = vld [vmem:[#allocation7_spill] sm:$0xff] }
 0x135   : > { %v5036_v13 = vpop.f32.mrf.mxu1  ;;  %v5078_v30 = vpop.f32.mrf.mxu0  ;;  %v3281_v10 = vshrl.u32 %v7172_v39, 16  ;;  %v3284_v0 = vshll.u32 %v7172_v39, 16  ;;  %v3658_v36 = vrot.slane %v6412_v26, 3 }
 0x136   : > { %v6648_v51 = vadd.f32 %v5078_v30, %v961_v11  ;;  %v3278_v38 = vor.u32 %v3277_v63, %v3274_v24  ;;  %v3290_v11 = vshrl.u32 %v7173_v35, 16  ;;  %v977_v30 = vadd.f32 %v5036_v13, %v7174_v8 }
 0x137   : > { %v968_v47 = vpop.f32.mrf.mxu1  ;;  %v1265_v17 = vpop.f32.mrf.mxu0  ;;  %v3286_v26 = vrot.slane %v3284_v0, 3  ;;  %v3659_v13 = vsel %vm3636_vm6, %v3656_v16, %v3658_v36  ;;  %v7177_v0 = vld [vmem:[#allocation10_spill] sm:$0xff] }
 0x138   : > { %v6656_v18 = vadd.f32 %v1265_v17, %v953_v3  ;;  %v3270_v3 = vsel %vm3154_vm7, %v3260_v25, %v3269_v1  ;;  %v7175_v17 = vld [vmem:[#allocation8_spill] sm:$0xff]  ;;  %v3279_v57 = vsel %vm3154_vm7, %v3269_v1, %v3278_v38 }
 0x139   : > { %v5039_v12 = vpop.f32.mrf.mxu1  ;;  %v5081_v44 = vpop.f32.mrf.mxu0  ;;  %5302 = vmatmul.mubr.msk.bf16.gmra.mxu1 %vm533_vm2, %v3252_v60  ;;  %5344 = vmatmul.mubr.msk.bf16.gmra.mxu0 %vm533_vm2, %v7170_v53  ;;  %v3657_v60 = vsel %vm3636_vm6, %v3654_v58, %v3656_v16  ;;  %v7176_v53 = vld [vmem:[#allocation9_spill] sm:$0xff]  ;;  %v3660_v16 = vrot.slane %v6436_v52, 3  ;;  %v7181_v52 = vld [vmem:[#allocation12_spill] sm:$0xff] }
 0x13a   : > { %v6663_v46 = vadd.f32 %v5081_v44, %v974_v27  ;;  %5305 = vmatprep.mubr.msk.bf16.mxu1 %vm533_vm2, %v3261_v6  ;;  %5347 = vmatprep.mubr.msk.bf16.mxu0 %vm533_vm2, %v3655_v21  ;;  %v969_v6 = vadd.f32 %v968_v47, %v7175_v17  ;;  %v3283_v21 = vrot.slane %v3281_v10, 2  ;;  %v3292_v27 = vrot.slane %v3290_v11, 2 }
 0x13b   : > { %v981_v50 = vpop.f32.mrf.mxu1  ;;  %v1278_v48 = vpop.f32.mrf.mxu0  ;;  %v3295_v44 = vrot.slane %v3293_v14, 3  ;;  %v990_v59 = vadd.f32 %v5039_v12, %v7176_v53  ;;  %v3299_v47 = vshrl.u32 %v6502_v61, 16  ;;  %v3302_v10 = vshll.u32 %v6502_v61, 16 }
 0x13c   : > { %v6673_v4 = vadd.f32 %v1278_v48, %v966_v19  ;;  %v982_v1 = vadd.f32 %v981_v50, %v7177_v0  ;;  %v3287_v12 = vor.u32 %v3286_v26, %v3283_v21  ;;  %v7179_v50 = vld [vmem:[#allocation11_spill] sm:$0xff]  ;;  %v6702_v21 = vld [vmem:[%s5608_s29 + $0xa0] ss:$0 sps:$4 sm:$0x77]  }
 0x13d   : > { %v5040_v31 = vpop.f32.mrf.mxu1  ;;  %v5082_v20 = vpop.f32.mrf.mxu0  ;;  %v3296_v8 = vor.u32 %v3295_v44, %v3292_v27  ;;  %v3301_v53 = vrot.slane %v3299_v47, 2  ;;  %v3661_v27 = vsel %vm3636_vm6, %v3658_v36, %v3660_v16  ;;  %v7182_v47 = vld [vmem:[#allocation14_spill] sm:$0xff]  ;;  %v3664_v36 = vrot.slane %v7172_v39, 3  ;;  %v7185_v39 = vld [vmem:[#allocation16_spill] sm:$0xff] }
 0x13e   : > { %v6678_v23 = vadd.f32 %v5082_v20, %v977_v30  ;;  %v3662_v30 = vrot.slane %v7165_v34, 3  ;;  %v7178_v20 = vld [vmem:[#allocation20_spill] sm:$0xff]  ;;  %v993_v17 = vadd.f32 %v5040_v31, %v7179_v50  ;;  %v3288_v34 = vsel %vm3154_vm7, %v3278_v38, %v3287_v12 }
 0x13f   : > { %v984_v24 = vpop.f32.mrf.mxu1  ;;  %v1281_v63 = vpop.f32.mrf.mxu0  ;;  %v3297_v31 = vsel %vm3154_vm7, %v3287_v12, %v3296_v8  ;;  %v7183_v12 = vld [vmem:[#allocation15_spill] sm:$0xff] }
 0x140   : > { %v6683_v19 = vadd.f32 %v1281_v63, %v969_v6  ;;  %v985_v26 = vadd.f32 %v984_v24, %v7181_v52  ;;  %v3663_v0 = vsel %vm3636_vm6, %v3660_v16, %v3662_v30 }
 0x141   : > { %v5043_v25 = vpop.f32.mrf.mxu1  ;;  %v5085_v58 = vpop.f32.mrf.mxu0  ;;  %5306 = vmatmul.mubr.msk.bf16.gmra.mxu1 %vm533_vm2, %v3270_v3  ;;  %5348 = vmatmul.mubr.msk.bf16.gmra.mxu0 %vm533_vm2, %v3657_v60  ;;  %v3308_v3 = vshrl.u32 %v7178_v20, 16  ;;  %v3311_v60 = vshll.u32 %v7178_v20, 16 }
 0x142   : > { %v6690_v48 = vadd.f32 %v5085_v58, %v990_v59  ;;  %5309 = vmatprep.mubr.msk.bf16.mxu1 %vm533_vm2, %v3279_v57  ;;  %5351 = vmatprep.mubr.msk.bf16.mxu0 %vm533_vm2, %v3659_v13  ;;  %v3304_v13 = vrot.slane %v3302_v10, 3  ;;  %v1006_v10 = vadd.f32 %v5043_v25, %v7182_v47  ;;  %v3320_v25 = vshll.u32 %v6702_v21, 16 }
 0x143   : > { %v997_v11 = vpop.f32.mrf.mxu1  ;;  %v1294_v14 = vpop.f32.mrf.mxu0 }
 0x144   : > { %v6699_v6 = vadd.f32 %v1294_v14, %v982_v1  ;;  %v3310_v1 = vrot.slane %v3308_v3, 2  ;;  %v3313_v14 = vrot.slane %v3311_v60, 3  ;;  %v3305_v38 = vor.u32 %v3304_v13, %v3301_v53  ;;  %v7184_v3 = vld [vmem:[#allocation21_spill] sm:$0xff] }
 0x145   : > { %v5044_v63 = vpop.f32.mrf.mxu1  ;;  %v5086_v57 = vpop.f32.mrf.mxu0  ;;  %v3666_v53 = vrot.slane %v7173_v35, 3  ;;  %v3322_v35 = vrot.slane %v3320_v25, 3 }
 0x146   : > { %7180 = vst [vmem:[#allocation13_spill] sm:$0xff] %v6699_v6  ;;  %v6705_v59 = vadd.f32 %v5086_v57, %v993_v17  ;;  %v3317_v17 = vshrl.u32 %v6702_v21, 16  ;;  %v998_v57 = vadd.f32 %v997_v11, %v7183_v12  ;;  %v1009_v13 = vadd.f32 %v5044_v63, %v7185_v39 }
 0x147   : > { %v1000_v44 = vpop.f32.mrf.mxu1  ;;  %v1297_v58 = vpop.f32.mrf.mxu0  ;;  %v3306_v47 = vsel %vm3154_vm7, %v3296_v8, %v3305_v38 }
 0x148   : > { %v6712_v50 = vadd.f32 %v1297_v58, %v985_v26 }
 0x149   : > { %v5089_v6 = vpop.f32.mrf.mxu0  ;;  %v5103_v24 = vpop.f32.mrf.mxu1  ;;  %5310 = vmatmul.mubr.msk.bf16.gmra.mxu1 %vm533_vm2, %v3288_v34  ;;  %5352 = vmatmul.mubr.msk.bf16.gmra.mxu0 %vm533_vm2, %v3661_v27  ;;  %v3314_v34 = vor.u32 %v3313_v14, %v3310_v1 }
 0x14a   : > { %v6719_v16 = vadd.f32 %v5089_v6, %v1006_v10  ;;  %v1801_v60 = vadd.f32 %v5103_v24, %v7184_v3  ;;  %5313 = vmatprep.mubr.msk.bf16.mxu1 %vm533_vm2, %v3297_v31  ;;  %5355 = vmatprep.mubr.msk.bf16.mxu0 %vm533_vm2, %v3663_v0  ;;  %v3665_v31 = vsel %vm3636_vm6, %v3662_v30, %v3664_v36  ;;  %v3319_v0 = vrot.slane %v3317_v17, 2  ;;  %v7186_v10 = vld [vmem:[#allocation19_spill] sm:$0xff] }
 0x14b   : > { %v1310_v52 = vpop.f32.mrf.mxu0  ;;  %v1656_v26 = vpop.f32.mrf.mxu1  ;;  %v1001_v24 = vadd.f32 %v1000_v44, %v7186_v10 }
 0x14c   : > { %v6727_v27 = vadd.f32 %v1310_v52, %v998_v57  ;;  %v1799_v11 = vadd.f32 %v1656_v26, %v6526_v49  ;;  %v3315_v57 = vsel %vm3154_vm7, %v3305_v38, %v3314_v34  ;;  %v3667_v49 = vsel %vm3636_vm6, %v3664_v36, %v3666_v53 }
 0x14d   : > { %v5090_v6 = vpop.f32.mrf.mxu0  ;;  %v5104_v58 = vpop.f32.mrf.mxu1  ;;  %v3323_v38 = vor.u32 %v3322_v35, %v3319_v0  ;;  %v3668_v36 = vrot.slane %v6502_v61, 3 }
 0x14e   : > { %v6733_v12 = vadd.f32 %v5090_v6, %v1009_v13  ;;  %v1802_v1 = vadd.f32 %v5104_v58, %v6530_v15 }
 0x14f   : > { %v1313_v14 = vpop.f32.mrf.mxu0  ;;  %v1659_v63 = vpop.f32.mrf.mxu1  ;;  %v3324_v58 = vsel %vm3154_vm7, %v3314_v34, %v3323_v38  ;;  %v3672_v34 = vrot.slane %v6702_v21, 3 }
 0x150   : > { %v6738_v3 = vadd.f32 %v1313_v14, %v1001_v24  ;;  %v1800_v8 = vadd.f32 %v1659_v63, %v6536_v42  ;;  %v3670_v42 = vrot.slane %v7178_v20, 3 }
 0x151   : > { %v5107_v52 = vpop.f32.mrf.mxu1  ;;  %v5149_v30 = vpop.f32.mrf.mxu0  ;;  %5314 = vmatmul.mubr.msk.bf16.gmra.mxu1 %vm533_vm2, %v3306_v47  ;;  %5356 = vmatmul.mubr.msk.bf16.gmra.mxu0 %vm533_vm2, %v3665_v31  ;;  %v3669_v47 = vsel %vm3636_vm6, %v3666_v53, %v3668_v36 }
 0x152   : > { %v1805_v44 = vadd.f32 %v5107_v52, %v6542_v37  ;;  %v6744_v15 = vadd.f32 %v5149_v30, %v1801_v60  ;;  %5317 = vmatprep.mubr.msk.bf16.mxu1 %vm533_vm2, %v3315_v57  ;;  %5359 = vmatprep.mubr.msk.bf16.mxu0 %vm533_vm2, %v3667_v49  ;;  %v3671_v0 = vsel %vm3636_vm6, %v3668_v36, %v3670_v42 }
 0x153   : > { %v1672_v17 = vpop.f32.mrf.mxu1  ;;  %v2138_v25 = vpop.f32.mrf.mxu0 }
 0x154   : > { %v1803_v26 = vadd.f32 %v1672_v17, %v6551_v45  ;;  %v6751_v39 = vadd.f32 %v2138_v25, %v1799_v11 }
 0x155   : > { %v5108_v13 = vpop.f32.mrf.mxu1  ;;  %v5150_v6 = vpop.f32.mrf.mxu0 }
 0x156   : > { %v1806_v37 = vadd.f32 %v5108_v13, %v6556_v5  ;;  %v6754_v60 = vadd.f32 %v5150_v6, %v1802_v1 }
 0x157   : > { %v1675_v31 = vpop.f32.mrf.mxu1  ;;  %v2141_v61 = vpop.f32.mrf.mxu0 }
 0x158   : > { %v1804_v20 = vadd.f32 %v1675_v31, %v6560_v33  ;;  %v6760_v10 = vadd.f32 %v2141_v61, %v1800_v8 }
 0x159   : > { %v5111_v45 = vpop.f32.mrf.mxu1  ;;  %v5153_v11 = vpop.f32.mrf.mxu0  ;;  %5318 = vmatmul.mubr.msk.bf16.gmra.mxu1 %vm533_vm2, %v3324_v58  ;;  %5360 = vmatmul.mubr.msk.bf16.gmra.mxu0 %vm533_vm2, %v3669_v47 }
 0x15a   : > { %v1809_v5 = vadd.f32 %v5111_v45, %v6567_v22  ;;  %v6765_v24 = vadd.f32 %v5153_v11, %v1805_v44  ;;  %5363 = vmatprep.mubr.msk.bf16.mxu0 %vm533_vm2, %v3671_v0  ;;  %v3673_v22 = vsel %vm3636_vm6, %v3670_v42, %v3672_v34 }
 0x15b   : > { %v1688_v53 = vpop.f32.mrf.mxu1  ;;  %v2154_v1 = vpop.f32.mrf.mxu0 }
 0x15c   : > { %v1807_v33 = vadd.f32 %v1688_v53, %v6575_v56  ;;  %v6770_v35 = vadd.f32 %v2154_v1, %v1803_v26 }
 0x15d   : > { %v5112_v14 = vpop.f32.mrf.mxu1  ;;  %v5154_v63 = vpop.f32.mrf.mxu0 }
 0x15e   : > { %v1810_v57 = vadd.f32 %v5112_v14, %v6578_v62  ;;  %v6773_v49 = vadd.f32 %v5154_v63, %v1806_v37 }
 0x15f   : > { %v1691_v8 = vpop.f32.mrf.mxu1  ;;  %v2157_v52 = vpop.f32.mrf.mxu0 }
 0x160   : > { %v1808_v30 = vadd.f32 %v1691_v8, %v6583_v32  ;;  %v6777_v44 = vadd.f32 %v2157_v52, %v1804_v20 }
 0x161   : > { %v5115_v21 = vpop.f32.mrf.mxu1  ;;  %v5157_v38 = vpop.f32.mrf.mxu0  ;;  %5364 = vmatmul.mubr.msk.bf16.gmra.mxu0 %vm533_vm2, %v3673_v22 }
 0x162   : > { %v1813_v56 = vadd.f32 %v5115_v21, %v6589_v9  ;;  %v6781_v36 = vadd.f32 %v5157_v38, %v1809_v5 }
 0x163   : > { %v1704_v17 = vpop.f32.mrf.mxu1  ;;  %v2170_v62 = vpop.f32.mrf.mxu0 }
 0x164   : > { %v1811_v25 = vadd.f32 %v1704_v17, %v6599_v40  ;;  %v6784_v26 = vadd.f32 %v2170_v62, %v1807_v33 }
 0x165   : > { %v5116_v42 = vpop.f32.mrf.mxu1  ;;  %v5158_v13 = vpop.f32.mrf.mxu0 }
 0x166   : > { %v1814_v32 = vadd.f32 %v5116_v42, %v6603_v7  ;;  %v6787_v6 = vadd.f32 %v5158_v13, %v1810_v57 }
 0x167   : > { %v1707_v37 = vpop.f32.mrf.mxu1  ;;  %v2173_v58 = vpop.f32.mrf.mxu0 }
 0x168   : > { %v1812_v47 = vadd.f32 %v1707_v37, %v6607_v29  ;;  %v6790_v31 = vadd.f32 %v2173_v58, %v1808_v30 }
 0x169   : > { %v5119_v9 = vpop.f32.mrf.mxu1  ;;  %v5161_v61 = vpop.f32.mrf.mxu0 }
 0x16a   : > { %v1817_v0 = vadd.f32 %v5119_v9, %v6612_v43  ;;  %v6793_v20 = vadd.f32 %v5161_v61, %v1813_v56 }
 0x16b   : > { %v1720_v40 = vpop.f32.mrf.mxu1  ;;  %v2186_v45 = vpop.f32.mrf.mxu0 }
 0x16c   : > { %v1815_v11 = vadd.f32 %v1720_v40, %v6621_v2  ;;  %v6796_v5 = vadd.f32 %v2186_v45, %v1811_v25 }
 0x16d   : > { %v5120_v7 = vpop.f32.mrf.mxu1  ;;  %v5162_v34 = vpop.f32.mrf.mxu0 }
 0x16e   : > { %v1818_v53 = vadd.f32 %v5120_v7, %v6623_v28  ;;  %v6799_v1 = vadd.f32 %v5162_v34, %v1814_v32 }
 0x16f   : > { %v1723_v29 = vpop.f32.mrf.mxu1  ;;  %v2189_v33 = vpop.f32.mrf.mxu0 }
 0x170   : > { %v1816_v14 = vadd.f32 %v1723_v29, %v6628_v54  ;;  %v6802_v63 = vadd.f32 %v2189_v33, %v1812_v47 }
 0x171   : > { %v5123_v43 = vpop.f32.mrf.mxu1  ;;  %v5165_v57 = vpop.f32.mrf.mxu0 }
 0x172   : > { %v1821_v22 = vadd.f32 %v5123_v43, %v6636_v41  ;;  %v6805_v8 = vadd.f32 %v5165_v57, %v1817_v0 }
 0x173   : > { %v1736_v2 = vpop.f32.mrf.mxu1  ;;  %v2202_v52 = vpop.f32.mrf.mxu0 }
 0x174   : > { %v1819_v30 = vadd.f32 %v1736_v2, %v6645_v55  ;;  %v6808_v21 = vadd.f32 %v2202_v52, %v1815_v11 }
 0x175   : > { %v5124_v28 = vpop.f32.mrf.mxu1  ;;  %v5166_v38 = vpop.f32.mrf.mxu0 }
 0x176   : > { %v1822_v56 = vadd.f32 %v5124_v28, %v6648_v51  ;;  %v6811_v17 = vadd.f32 %v5166_v38, %v1818_v53 }
 0x177   : > { %v1739_v54 = vpop.f32.mrf.mxu1  ;;  %v2205_v62 = vpop.f32.mrf.mxu0 }
 0x178   : > { %v1820_v25 = vadd.f32 %v1739_v54, %v6656_v18  ;;  %v6814_v42 = vadd.f32 %v2205_v62, %v1816_v14  ;;  %v7187_v14 = vld [vmem:[#allocation13_spill] sm:$0xff] }
 0x179   : > { %v5127_v41 = vpop.f32.mrf.mxu1  ;;  %v5169_v13 = vpop.f32.mrf.mxu0 }
 0x17a   : > { %v1825_v32 = vadd.f32 %v5127_v41, %v6663_v46  ;;  %v6817_v37 = vadd.f32 %v5169_v13, %v1821_v22 }
 0x17b   : > { %v1752_v55 = vpop.f32.mrf.mxu1  ;;  %v2218_v58 = vpop.f32.mrf.mxu0 }
 0x17c   : > { %v1823_v47 = vadd.f32 %v1752_v55, %v6673_v4  ;;  %v6820_v9 = vadd.f32 %v2218_v58, %v1819_v30 }
 0x17d   : > { %v5128_v51 = vpop.f32.mrf.mxu1  ;;  %v5170_v61 = vpop.f32.mrf.mxu0 }
 0x17e   : > { %v1826_v0 = vadd.f32 %v5128_v51, %v6678_v23  ;;  %v6823_v40 = vadd.f32 %v5170_v61, %v1822_v56 }
 0x17f   : > { %v1755_v18 = vpop.f32.mrf.mxu1  ;;  %v2221_v45 = vpop.f32.mrf.mxu0 }
 0x180   : > { %v1824_v11 = vadd.f32 %v1755_v18, %v6683_v19  ;;  %v6826_v7 = vadd.f32 %v2221_v45, %v1820_v25 }
 0x181   : > { %v5131_v46 = vpop.f32.mrf.mxu1  ;;  %v5173_v34 = vpop.f32.mrf.mxu0 }
 0x182   : > { %v1829_v53 = vadd.f32 %v5131_v46, %v6690_v48  ;;  %v6829_v29 = vadd.f32 %v5173_v34, %v1825_v32 }
 0x183   : > { %v1768_v4 = vpop.f32.mrf.mxu1  ;;  %v2234_v33 = vpop.f32.mrf.mxu0 }
 0x184   : > { %v1827_v43 = vadd.f32 %v1768_v4, %v7187_v14  ;;  %v6832_v57 = vadd.f32 %v2234_v33, %v1823_v47 }
 0x185   : > { %v5132_v23 = vpop.f32.mrf.mxu1  ;;  %v5174_v22 = vpop.f32.mrf.mxu0 }
 0x186   : > { %v1830_v2 = vadd.f32 %v5132_v23, %v6705_v59  ;;  %v6835_v52 = vadd.f32 %v5174_v22, %v1826_v0 }
 0x187   : > { %v1771_v19 = vpop.f32.mrf.mxu1  ;;  %v2237_v30 = vpop.f32.mrf.mxu0 }
 0x188   : > { %v1828_v28 = vadd.f32 %v1771_v19, %v6712_v50  ;;  %v6838_v38 = vadd.f32 %v2237_v30, %v1824_v11 }
 0x189   : > { %v5135_v48 = vpop.f32.mrf.mxu1  ;;  %v5177_v56 = vpop.f32.mrf.mxu0 }
 0x18a   : > { %v1833_v54 = vadd.f32 %v5135_v48, %v6719_v16  ;;  %v6841_v62 = vadd.f32 %v5177_v56, %v1829_v53 }
 0x18b   : > { %v1784_v25 = vpop.f32.mrf.mxu1  ;;  %v2250_v41 = vpop.f32.mrf.mxu0 }
 0x18c   : > { %v1831_v13 = vadd.f32 %v1784_v25, %v6727_v27  ;;  %v6844_v32 = vadd.f32 %v2250_v41, %v1827_v43 }
 0x18d   : > { %v5136_v59 = vpop.f32.mrf.mxu1  ;;  %v5178_v55 = vpop.f32.mrf.mxu0 }
 0x18e   : > { %v1834_v58 = vadd.f32 %v5136_v59, %v6733_v12  ;;  %v6847_v47 = vadd.f32 %v5178_v55, %v1830_v2 }
 0x18f   : > { %v1787_v50 = vpop.f32.mrf.mxu1  ;;  %v2253_v51 = vpop.f32.mrf.mxu0 }
 0x190   : > { %v1832_v61 = vadd.f32 %v1787_v50, %v6738_v3  ;;  %v6850_v0 = vadd.f32 %v2253_v51, %v1828_v28 }
 0x191   : > { %v5181_v16 = vpop.f32.mrf.mxu0  ;;  %v5195_v18 = vpop.f32.mrf.mxu1 }
 0x192   : > { %v6852_v45 = vadd.f32 %v5181_v16, %v1833_v54  ;;  %v2632_v27 = vadd.f32 %v5195_v18, %v6744_v15 }
 0x193   : > { %v2266_v11 = vpop.f32.mrf.mxu0  ;;  %v2487_v46 = vpop.f32.mrf.mxu1 }
 0x194   : > { %v6855_v34 = vadd.f32 %v2266_v11, %v1831_v13  ;;  %v2630_v12 = vadd.f32 %v2487_v46, %v6751_v39 }
 0x195   : > { %v5182_v53 = vpop.f32.mrf.mxu0  ;;  %v5196_v4 = vpop.f32.mrf.mxu1 }
 0x196   : > { %v6858_v33 = vadd.f32 %v5182_v53, %v1834_v58  ;;  %v2633_v3 = vadd.f32 %v5196_v4, %v6754_v60 }
 0x197   : > { %v2269_v14 = vpop.f32.mrf.mxu0  ;;  %v2490_v43 = vpop.f32.mrf.mxu1 }
 0x198   : > { %v6861_v23 = vadd.f32 %v2269_v14, %v1832_v61  ;;  %v2631_v22 = vadd.f32 %v2490_v43, %v6760_v10 }
 0x199   : > { %v5199_v2 = vpop.f32.mrf.mxu1  ;;  %v5241_v15 = vpop.f32.mrf.mxu0 }
 0x19a   : > { %v2636_v19 = vadd.f32 %v5199_v2, %v6765_v24  ;;  %v6865_v30 = vadd.f32 %v5241_v15, %v2632_v27 }
 0x19b   : > { %v2503_v28 = vpop.f32.mrf.mxu1  ;;  %v2961_v39 = vpop.f32.mrf.mxu0 }
 0x19c   : > { %v2634_v48 = vadd.f32 %v2503_v28, %v6770_v35  ;;  %v6868_v56 = vadd.f32 %v2961_v39, %v2630_v12 }
 0x19d   : > { %v5200_v54 = vpop.f32.mrf.mxu1  ;;  %v5242_v60 = vpop.f32.mrf.mxu0 }
 0x19e   : > { %v2637_v25 = vadd.f32 %v5200_v54, %v6773_v49  ;;  %v6871_v41 = vadd.f32 %v5242_v60, %v2633_v3 }
 0x19f   : > { %v2506_v13 = vpop.f32.mrf.mxu1  ;;  %v2964_v10 = vpop.f32.mrf.mxu0 }
 0x1a0   : > { %v2635_v59 = vadd.f32 %v2506_v13, %v6777_v44  ;;  %v6874_v55 = vadd.f32 %v2964_v10, %v2631_v22 }
 0x1a1   : > { %v5203_v24 = vpop.f32.mrf.mxu1  ;;  %v5245_v58 = vpop.f32.mrf.mxu0 }
 0x1a2   : > { %v2640_v50 = vadd.f32 %v5203_v24, %v6781_v36  ;;  %v6877_v51 = vadd.f32 %v5245_v58, %v2636_v19 }
 0x1a3   : > { %v2519_v35 = vpop.f32.mrf.mxu1  ;;  %v2977_v61 = vpop.f32.mrf.mxu0 }
 0x1a4   : > { %v2638_v16 = vadd.f32 %v2519_v35, %v6784_v26  ;;  %v6880_v18 = vadd.f32 %v2977_v61, %v2634_v48 }
 0x1a5   : > { %v5204_v49 = vpop.f32.mrf.mxu1  ;;  %v5246_v27 = vpop.f32.mrf.mxu0 }
 0x1a6   : > { %v2641_v11 = vadd.f32 %v5204_v49, %v6787_v6  ;;  %v6883_v46 = vadd.f32 %v5246_v27, %v2637_v25 }
 0x1a7   : > { %v2522_v44 = vpop.f32.mrf.mxu1  ;;  %v2980_v12 = vpop.f32.mrf.mxu0 }
 0x1a8   : > { %v2639_v53 = vadd.f32 %v2522_v44, %v6790_v31  ;;  %v6886_v4 = vadd.f32 %v2980_v12, %v2635_v59 }
 0x1a9   : > { %v5207_v36 = vpop.f32.mrf.mxu1  ;;  %v5249_v3 = vpop.f32.mrf.mxu0 }
 0x1aa   : > { %v2644_v14 = vadd.f32 %v5207_v36, %v6793_v20  ;;  %v6889_v43 = vadd.f32 %v5249_v3, %v2640_v50 }
 0x1ab   : > { %v2535_v26 = vpop.f32.mrf.mxu1  ;;  %v2993_v22 = vpop.f32.mrf.mxu0 }
 0x1ac   : > { %v2642_v2 = vadd.f32 %v2535_v26, %v6796_v5  ;;  %v6892_v15 = vadd.f32 %v2993_v22, %v2638_v16 }
 0x1ad   : > { %v5208_v6 = vpop.f32.mrf.mxu1  ;;  %v5250_v19 = vpop.f32.mrf.mxu0 }
 0x1ae   : > { %v2645_v28 = vadd.f32 %v5208_v6, %v6799_v1  ;;  %v6895_v39 = vadd.f32 %v5250_v19, %v2641_v11 }
 0x1af   : > { %v2538_v31 = vpop.f32.mrf.mxu1  ;;  %v2996_v48 = vpop.f32.mrf.mxu0 }
 0x1b0   : > { %v2643_v54 = vadd.f32 %v2538_v31, %v6802_v63  ;;  %v6898_v60 = vadd.f32 %v2996_v48, %v2639_v53 }
 0x1b1   : > { %v5211_v20 = vpop.f32.mrf.mxu1  ;;  %v5253_v25 = vpop.f32.mrf.mxu0 }
 0x1b2   : > { %v2648_v13 = vadd.f32 %v5211_v20, %v6805_v8  ;;  %v6901_v10 = vadd.f32 %v5253_v25, %v2644_v14 }
 0x1b3   : > { %v2551_v5 = vpop.f32.mrf.mxu1  ;;  %v3009_v59 = vpop.f32.mrf.mxu0 }
 0x1b4   : > { %v2646_v24 = vadd.f32 %v2551_v5, %v6808_v21  ;;  %v6904_v58 = vadd.f32 %v3009_v59, %v2642_v2 }
 0x1b5   : > { %v5212_v1 = vpop.f32.mrf.mxu1  ;;  %v5254_v50 = vpop.f32.mrf.mxu0 }
 0x1b6   : > { %v2649_v35 = vadd.f32 %v5212_v1, %v6811_v17  ;;  %v6907_v61 = vadd.f32 %v5254_v50, %v2645_v28 }
 0x1b7   : > { %v2554_v63 = vpop.f32.mrf.mxu1  ;;  %v3012_v16 = vpop.f32.mrf.mxu0 }
 0x1b8   : > { %v2647_v49 = vadd.f32 %v2554_v63, %v6814_v42  ;;  %v6910_v27 = vadd.f32 %v3012_v16, %v2643_v54 }
 0x1b9   : > { %v5215_v8 = vpop.f32.mrf.mxu1  ;;  %v5257_v11 = vpop.f32.mrf.mxu0 }
 0x1ba   : > { %v2652_v44 = vadd.f32 %v5215_v8, %v6817_v37  ;;  %v6913_v12 = vadd.f32 %v5257_v11, %v2648_v13 }
 0x1bb   : > { %v2567_v21 = vpop.f32.mrf.mxu1  ;;  %v3025_v53 = vpop.f32.mrf.mxu0 }
 0x1bc   : > { %v2650_v36 = vadd.f32 %v2567_v21, %v6820_v9  ;;  %v6916_v3 = vadd.f32 %v3025_v53, %v2646_v24 }
 0x1bd   : > { %v5216_v17 = vpop.f32.mrf.mxu1  ;;  %v5258_v14 = vpop.f32.mrf.mxu0 }
 0x1be   : > { %v2653_v26 = vadd.f32 %v5216_v17, %v6823_v40  ;;  %v6919_v22 = vadd.f32 %v5258_v14, %v2649_v35 }
 0x1bf   : > { %v2570_v42 = vpop.f32.mrf.mxu1  ;;  %v3028_v2 = vpop.f32.mrf.mxu0 }
 0x1c0   : > { %v2651_v6 = vadd.f32 %v2570_v42, %v6826_v7  ;;  %v6922_v19 = vadd.f32 %v3028_v2, %v2647_v49 }
 0x1c1   : > { %v5219_v37 = vpop.f32.mrf.mxu1  ;;  %v5261_v28 = vpop.f32.mrf.mxu0 }
 0x1c2   : > { %v2656_v31 = vadd.f32 %v5219_v37, %v6829_v29  ;;  %v6925_v48 = vadd.f32 %v5261_v28, %v2652_v44 }
 0x1c3   : > { %v2583_v9 = vpop.f32.mrf.mxu1  ;;  %v3041_v54 = vpop.f32.mrf.mxu0 }
 0x1c4   : > { %v2654_v20 = vadd.f32 %v2583_v9, %v6832_v57  ;;  %v6928_v25 = vadd.f32 %v3041_v54, %v2650_v36 }
 0x1c5   : > { %v5220_v40 = vpop.f32.mrf.mxu1  ;;  %v5262_v13 = vpop.f32.mrf.mxu0 }
 0x1c6   : > { %v2657_v5 = vadd.f32 %v5220_v40, %v6835_v52  ;;  %v6931_v59 = vadd.f32 %v5262_v13, %v2653_v26 }
 0x1c7   : > { %v2586_v7 = vpop.f32.mrf.mxu1  ;;  %v3044_v24 = vpop.f32.mrf.mxu0 }
 0x1c8   : > { %v2655_v1 = vadd.f32 %v2586_v7, %v6838_v38  ;;  %v6934_v50 = vadd.f32 %v3044_v24, %v2651_v6 }
 0x1c9   : > { %v5223_v29 = vpop.f32.mrf.mxu1  ;;  %v5265_v35 = vpop.f32.mrf.mxu0 }
 0x1ca   : > { %v2660_v63 = vadd.f32 %v5223_v29, %v6841_v62  ;;  %v6937_v16 = vadd.f32 %v5265_v35, %v2656_v31 }
 0x1cb   : > { %v2599_v57 = vpop.f32.mrf.mxu1  ;;  %v3057_v49 = vpop.f32.mrf.mxu0 }
 0x1cc   : > { %v2658_v8 = vadd.f32 %v2599_v57, %v6844_v32  ;;  %v6940_v11 = vadd.f32 %v3057_v49, %v2654_v20 }
 0x1cd   : > { %v5224_v52 = vpop.f32.mrf.mxu1  ;;  %v5266_v44 = vpop.f32.mrf.mxu0 }
 0x1ce   : > { %v2661_v21 = vadd.f32 %v5224_v52, %v6847_v47  ;;  %v6943_v53 = vadd.f32 %v5266_v44, %v2657_v5  ;;  %v6972_v44 = vld [vmem:[%s7134_s2] ss:$0 sm:$0xff] }
 0x1cf   : > { %v2602_v38 = vpop.f32.mrf.mxu1  ;;  %v3060_v36 = vpop.f32.mrf.mxu0 }
 0x1d0   : > { %v2659_v17 = vadd.f32 %v2602_v38, %v6850_v0  ;;  %v6946_v14 = vadd.f32 %v3060_v36, %v2655_v1 }
 0x1d1   : > { %v5227_v62 = vpop.f32.mrf.mxu1  ;;  %v5269_v26 = vpop.f32.mrf.mxu0 }
 0x1d2   : > { %v2664_v42 = vadd.f32 %v5227_v62, %v6852_v45  ;;  %v6949_v2 = vadd.f32 %v5269_v26, %v2660_v63 }
 0x1d3   : > { %v2615_v32 = vpop.f32.mrf.mxu1  ;;  %v3073_v6 = vpop.f32.mrf.mxu0 }
 0x1d4   : > { %v2662_v37 = vadd.f32 %v2615_v32, %v6855_v34  ;;  %v6952_v28 = vadd.f32 %v3073_v6, %v2658_v8 }
 0x1d5   : > { %v5228_v47 = vpop.f32.mrf.mxu1  ;;  %v5270_v31 = vpop.f32.mrf.mxu0 }
 0x1d6   : > { %v2665_v9 = vadd.f32 %v5228_v47, %v6858_v33  ;;  %v6955_v54 = vadd.f32 %v5270_v31, %v2661_v21 }
 0x1d7   : > { %v2618_v0 = vpop.f32.mrf.mxu1  ;;  %v3076_v20 = vpop.f32.mrf.mxu0 }
 0x1d8   : > { %v2663_v40 = vadd.f32 %v2618_v0, %v6861_v23  ;;  %v6958_v13 = vadd.f32 %v3076_v20, %v2659_v17 }
 0x1d9   : > { %v5273_v45 = vpop.f32.mrf.mxu0  ;;  %v5287_v5 = vpop.f32.mrf.mxu1 }
 0x1da   : > { %v6960_v7 = vadd.f32 %v5273_v45, %v2664_v42  ;;  %v3588_v49 = vadd.f32 %v5287_v5, %v6865_v30 }
 0x1db   : > { %v3089_v34 = vpop.f32.mrf.mxu0  ;;  %v3443_v24 = vpop.f32.mrf.mxu1 }
 0x1dc   : > { %v6962_v1 = vadd.f32 %v3089_v34, %v2662_v37  ;;  %v3586_v21 = vadd.f32 %v3443_v24, %v6868_v56 }
 0x1dd   : > { %v5274_v29 = vpop.f32.mrf.mxu0  ;;  %v5288_v35 = vpop.f32.mrf.mxu1 }
 0x1de   : > { %v6964_v33 = vadd.f32 %v5274_v29, %v2665_v9  ;;  %v3589_v62 = vadd.f32 %v5288_v35, %v6871_v41 }
 0x1df   : > { %v3092_v63 = vpop.f32.mrf.mxu0  ;;  %v3446_v57 = vpop.f32.mrf.mxu1 }
 0x1e0   : > { %v6967_v23 = vadd.f32 %v3092_v63, %v2663_v40  ;;  %v3587_v31 = vadd.f32 %v3446_v57, %v6874_v55 }
 0x1e1   : > { %v5291_v8 = vpop.f32.mrf.mxu1  ;;  %v5333_v52 = vpop.f32.mrf.mxu0 }
 0x1e2   : > { %v3937_v38 = vadd.f32 %v5333_v52, %v3588_v49  ;;  %v3592_v9 = vadd.f32 %v5291_v8, %v6877_v51 }
 0x1e3   : > { %v3459_v36 = vpop.f32.mrf.mxu1  ;;  %v3792_v17 = vpop.f32.mrf.mxu0 }
 0x1e4   : > { %v3980_v26 = vadd.f32 %v6972_v44, %v3937_v38  ;;  %v3935_v30 = vadd.f32 %v3792_v17, %v3586_v21  ;;  %v3590_v55 = vadd.f32 %v3459_v36, %v6880_v18 }
 0x1e5   : > { %v5292_v42 = vpop.f32.mrf.mxu1  ;;  %v5334_v32 = vpop.f32.mrf.mxu0 }
 0x1e6   : > { %v4016_v6 = vmax.f32 %v3980_v26, 0.0  ;;  %v3978_v37 = vadd.f32 %v6972_v44, %v3935_v30  ;;  %v3938_v47 = vadd.f32 %v5334_v32, %v3589_v62  ;;  %v3593_v51 = vadd.f32 %v5292_v42, %v6883_v46 }
 0x1e7   : > { %v3462_v56 = vpop.f32.mrf.mxu1  ;;  %v3795_v41 = vpop.f32.mrf.mxu0 }
 0x1e8   : > { %v4712_v0 = vpack.c.bf16 %v4016_v6, %v4016_v6  ;;  %v4014_v20 = vmax.f32 %v3978_v37, 0.0  ;;  %v3981_v40 = vadd.f32 %v6972_v44, %v3938_v47  ;;  %v3936_v45 = vadd.f32 %v3795_v41, %v3587_v31 }
 0x1e9   : > { %v5295_v5 = vpop.f32.mrf.mxu1  ;;  %v5337_v34 = vpop.f32.mrf.mxu0  ;;  %v3591_v30 = vadd.f32 %v3462_v56, %v6886_v4 }
 0x1ea   : > { %4197 = vst.msk [vmem:[%s6983_s25 + $0x8] sm:$0xf] %vm4194_vm8, %v4712_v0  ;;  %v4710_v24 = vpack.c.bf16 %v4014_v20, %v4014_v20  ;;  %v4017_v29 = vmax.f32 %v3981_v40, 0.0  ;;  %v3941_v35 = vadd.f32 %v5337_v34, %v3592_v9  ;;  %v3979_v63 = vadd.f32 %v6972_v44, %v3936_v45 }
 0x1eb   : > { %v3475_v57 = vpop.f32.mrf.mxu1  ;;  %v3808_v49 = vpop.f32.mrf.mxu0  ;;  %v3596_v42 = vadd.f32 %v5295_v5, %v6889_v43 }
 0x1ec   : > { %4195 = vst.msk [vmem:[%s6983_s25] sm:$0xf] %vm4194_vm8, %v4710_v24  ;;  %v4713_v8 = vpack.c.bf16 %v4017_v29, %v4017_v29  ;;  %v3984_v52 = vadd.f32 %v6972_v44, %v3941_v35  ;;  %v3939_v21 = vadd.f32 %v3808_v49, %v3590_v55  ;;  %v4015_v38 = vmax.f32 %v3979_v63, 0.0 }
 0x1ed   : > { %v5296_v17 = vpop.f32.mrf.mxu1  ;;  %v5338_v62 = vpop.f32.mrf.mxu0  ;;  %v3594_v4 = vadd.f32 %v3475_v57, %v6892_v15 }
 0x1ee   : > { %4198 = vst.msk [vmem:[%s6983_s25 + $0xc] sm:$0xf] %vm4194_vm8, %v4713_v8  ;;  %v4020_v18 = vmax.f32 %v3984_v52, 0.0  ;;  %v3982_v36 = vadd.f32 %v6972_v44, %v3939_v21  ;;  %v3942_v26 = vadd.f32 %v5338_v62, %v3593_v51  ;;  %v4711_v32 = vpack.c.bf16 %v4015_v38, %v4015_v38 }
 0x1ef   : > { %v3478_v6 = vpop.f32.mrf.mxu1  ;;  %v3811_v46 = vpop.f32.mrf.mxu0  ;;  %v3597_v34 = vadd.f32 %v5296_v17, %v6895_v39 }
 0x1f0   : > { %v4716_v37 = vpack.c.bf16 %v4020_v18, %v4020_v18  ;;  %v4018_v47 = vmax.f32 %v3982_v36, 0.0  ;;  %v3985_v31 = vadd.f32 %v6972_v44, %v3942_v26  ;;  %4196 = vst.msk [vmem:[%s6983_s25 + $0x4] sm:$0xf] %vm4194_vm8, %v4711_v32  ;;  %v3940_v41 = vadd.f32 %v3811_v46, %v3591_v30 }
 0x1f1   : > { %v5299_v9 = vpop.f32.mrf.mxu1  ;;  %v5341_v0 = vpop.f32.mrf.mxu0  ;;  %v3595_v8 = vadd.f32 %v3478_v6, %v6898_v60 }
 0x1f2   : > { %4201 = vst.msk [vmem:[%s6983_s25 + $0x18] sm:$0xf] %vm4194_vm8, %v4716_v37  ;;  %v4714_v56 = vpack.c.bf16 %v4018_v47, %v4018_v47  ;;  %v4021_v20 = vmax.f32 %v3985_v31, 0.0  ;;  %v3945_v40 = vadd.f32 %v5341_v0, %v3596_v42  ;;  %v3983_v43 = vadd.f32 %v6972_v44, %v3940_v41 }
 0x1f3   : > { %v3491_v45 = vpop.f32.mrf.mxu1  ;;  %v3824_v5 = vpop.f32.mrf.mxu0  ;;  %v3600_v38 = vadd.f32 %v5299_v9, %v6901_v10 }
 0x1f4   : > { %4199 = vst.msk [vmem:[%s6983_s25 + $0x10] sm:$0xf] %vm4194_vm8, %v4714_v56  ;;  %v4717_v55 = vpack.c.bf16 %v4021_v20, %v4021_v20  ;;  %v3988_v24 = vadd.f32 %v6972_v44, %v3945_v40  ;;  %v3943_v29 = vadd.f32 %v3824_v5, %v3594_v4  ;;  %v4019_v35 = vmax.f32 %v3983_v43, 0.0 }
 0x1f5   : > { %v5300_v63 = vpop.f32.mrf.mxu1  ;;  %v5342_v49 = vpop.f32.mrf.mxu0  ;;  %v3598_v60 = vadd.f32 %v3491_v45, %v6904_v58 }
 0x1f6   : > { %4202 = vst.msk [vmem:[%s6983_s25 + $0x1c] sm:$0xf] %vm4194_vm8, %v4717_v55  ;;  %v4024_v15 = vmax.f32 %v3988_v24, 0.0  ;;  %v3986_v57 = vadd.f32 %v6972_v44, %v3943_v29  ;;  %v3946_v51 = vadd.f32 %v5342_v49, %v3597_v34  ;;  %v4715_v52 = vpack.c.bf16 %v4019_v35, %v4019_v35 }
 0x1f7   : > { %v3494_v21 = vpop.f32.mrf.mxu1  ;;  %v3827_v39 = vpop.f32.mrf.mxu0  ;;  %v3601_v47 = vadd.f32 %v5300_v63, %v6907_v61 }
 0x1f8   : > { %v4720_v17 = vpack.c.bf16 %v4024_v15, %v4024_v15  ;;  %v4022_v62 = vmax.f32 %v3986_v57, 0.0  ;;  %v3989_v18 = vadd.f32 %v6972_v44, %v3946_v51  ;;  %4200 = vst.msk [vmem:[%s6983_s25 + $0x14] sm:$0xf] %vm4194_vm8, %v4715_v52  ;;  %v3944_v36 = vadd.f32 %v3827_v39, %v3595_v8 }
 0x1f9   : > { %v5303_v26 = vpop.f32.mrf.mxu1  ;;  %v5345_v30 = vpop.f32.mrf.mxu0  ;;  %v3599_v43 = vadd.f32 %v3494_v21, %v6910_v27 }
 0x1fa   : > { %4205 = vst.msk [vmem:[%s6983_s25 + $0x28] sm:$0xf] %vm4194_vm8, %v4720_v17  ;;  %v4718_v32 = vpack.c.bf16 %v4022_v62, %v4022_v62  ;;  %v4025_v6 = vmax.f32 %v3989_v18, 0.0  ;;  %v3949_v46 = vadd.f32 %v5345_v30, %v3600_v38  ;;  %v3987_v10 = vadd.f32 %v6972_v44, %v3944_v36 }
 0x1fb   : > { %v3507_v42 = vpop.f32.mrf.mxu1  ;;  %v3840_v37 = vpop.f32.mrf.mxu0  ;;  %v3604_v34 = vadd.f32 %v5303_v26, %v6913_v12 }
 0x1fc   : > { %4203 = vst.msk [vmem:[%s6983_s25 + $0x20] sm:$0xf] %vm4194_vm8, %v4718_v32  ;;  %v4721_v31 = vpack.c.bf16 %v4025_v6, %v4025_v6  ;;  %v3992_v41 = vadd.f32 %v6972_v44, %v3949_v46  ;;  %v3947_v9 = vadd.f32 %v3840_v37, %v3598_v60  ;;  %v4023_v0 = vmax.f32 %v3987_v10, 0.0 }
 0x1fd   : > { %v5304_v4 = vpop.f32.mrf.mxu1  ;;  %v5346_v56 = vpop.f32.mrf.mxu0  ;;  %v3602_v27 = vadd.f32 %v3507_v42, %v6916_v3 }
 0x1fe   : > { %4206 = vst.msk [vmem:[%s6983_s25 + $0x2c] sm:$0xf] %vm4194_vm8, %v4721_v31  ;;  %v4028_v58 = vmax.f32 %v3992_v41, 0.0  ;;  %v3990_v20 = vadd.f32 %v6972_v44, %v3947_v9  ;;  %v3950_v40 = vadd.f32 %v5346_v56, %v3601_v47  ;;  %v4719_v45 = vpack.c.bf16 %v4023_v0, %v4023_v0 }
 0x1ff   : > { %v3510_v5 = vpop.f32.mrf.mxu1  ;;  %v3843_v61 = vpop.f32.mrf.mxu0  ;;  %v3605_v21 = vadd.f32 %v5304_v4, %v6919_v22 }
 0x200   : > { %v4724_v55 = vpack.c.bf16 %v4028_v58, %v4028_v58  ;;  %v4026_v24 = vmax.f32 %v3990_v20, 0.0  ;;  %v3993_v29 = vadd.f32 %v6972_v44, %v3950_v40  ;;  %4204 = vst.msk [vmem:[%s6983_s25 + $0x24] sm:$0xf] %vm4194_vm8, %v4719_v45  ;;  %v3948_v35 = vadd.f32 %v3843_v61, %v3599_v43 }
 0x201   : > { %v5307_v63 = vpop.f32.mrf.mxu1  ;;  %v5349_v49 = vpop.f32.mrf.mxu0  ;;  %v3603_v60 = vadd.f32 %v3510_v5, %v6922_v19 }
 0x202   : > { %4209 = vst.msk [vmem:[%s6983_s25 + $0x38] sm:$0xf] %vm4194_vm8, %v4724_v55  ;;  %v4722_v15 = vpack.c.bf16 %v4026_v24, %v4026_v24  ;;  %v4029_v57 = vmax.f32 %v3993_v29, 0.0  ;;  %v3953_v51 = vadd.f32 %v5349_v49, %v3604_v34  ;;  %v3991_v12 = vadd.f32 %v6972_v44, %v3948_v35 }
 0x203   : > { %v3523_v8 = vpop.f32.mrf.mxu1  ;;  %v3856_v52 = vpop.f32.mrf.mxu0  ;;  %v3608_v46 = vadd.f32 %v5307_v63, %v6925_v48 }
 0x204   : > { %4207 = vst.msk [vmem:[%s6983_s25 + $0x30] sm:$0xf] %vm4194_vm8, %v4722_v15  ;;  %v4725_v39 = vpack.c.bf16 %v4029_v57, %v4029_v57  ;;  %v3996_v38 = vadd.f32 %v6972_v44, %v3953_v51  ;;  %v3951_v17 = vadd.f32 %v3856_v52, %v3602_v27  ;;  %v4027_v62 = vmax.f32 %v3991_v12, 0.0 }
 0x205   : > { %v5308_v18 = vpop.f32.mrf.mxu1  ;;  %v5350_v36 = vpop.f32.mrf.mxu0  ;;  %v3606_v19 = vadd.f32 %v3523_v8, %v6928_v25 }
 0x206   : > { %4210 = vst.msk [vmem:[%s6983_s25 + $0x3c] sm:$0xf] %vm4194_vm8, %v4725_v39  ;;  %v4032_v3 = vmax.f32 %v3996_v38, 0.0  ;;  %v3994_v26 = vadd.f32 %v6972_v44, %v3951_v17  ;;  %v3954_v30 = vadd.f32 %v5350_v36, %v3605_v21  ;;  %v4723_v32 = vpack.c.bf16 %v4027_v62, %v4027_v62 }
 0x207   : > { %v3526_v6 = vpop.f32.mrf.mxu1  ;;  %v3859_v22 = vpop.f32.mrf.mxu0  ;;  %v3609_v20 = vadd.f32 %v5308_v18, %v6931_v59 }
 0x208   : > { %v4728_v10 = vpack.c.bf16 %v4032_v3, %v4032_v3  ;;  %v4030_v42 = vmax.f32 %v3994_v26, 0.0  ;;  %v3997_v37 = vadd.f32 %v6972_v44, %v3954_v30  ;;  %4208 = vst.msk [vmem:[%s6983_s25 + $0x34] sm:$0xf] %vm4194_vm8, %v4723_v32  ;;  %v3952_v47 = vadd.f32 %v3859_v22, %v3603_v60 }
 0x209   : > { %v5311_v31 = vpop.f32.mrf.mxu1  ;;  %v5353_v41 = vpop.f32.mrf.mxu0  ;;  %v3607_v29 = vadd.f32 %v3526_v6, %v6934_v50 }
 0x20a   : > { %4213 = vst.msk [vmem:[%s6983_s25 + $0x48] sm:$0xf] %vm4194_vm8, %v4728_v10  ;;  %v4726_v9 = vpack.c.bf16 %v4030_v42, %v4030_v42  ;;  %v4033_v0 = vmax.f32 %v3997_v37, 0.0  ;;  %v3957_v4 = vadd.f32 %v5353_v41, %v3608_v46  ;;  %v3995_v48 = vadd.f32 %v6972_v44, %v3952_v47 }
 0x20b   : > { %v3539_v56 = vpop.f32.mrf.mxu1  ;;  %v3872_v58 = vpop.f32.mrf.mxu0  ;;  %v3612_v49 = vadd.f32 %v5311_v31, %v6937_v16 }
 0x20c   : > { %4211 = vst.msk [vmem:[%s6983_s25 + $0x40] sm:$0xf] %vm4194_vm8, %v4726_v9  ;;  %v4729_v40 = vpack.c.bf16 %v4033_v0, %v4033_v0  ;;  %v4000_v43 = vadd.f32 %v6972_v44, %v3957_v4  ;;  %v3955_v45 = vadd.f32 %v3872_v58, %v3606_v19  ;;  %v4031_v5 = vmax.f32 %v3995_v48, 0.0 }
 0x20d   : > { %v5312_v61 = vpop.f32.mrf.mxu1  ;;  %v5354_v34 = vpop.f32.mrf.mxu0  ;;  %v3610_v50 = vadd.f32 %v3539_v56, %v6940_v11 }
 0x20e   : > { %4214 = vst.msk [vmem:[%s6983_s25 + $0x4c] sm:$0xf] %vm4194_vm8, %v4729_v40  ;;  %v4036_v25 = vmax.f32 %v4000_v43, 0.0  ;;  %v3998_v55 = vadd.f32 %v6972_v44, %v3955_v45  ;;  %v3958_v24 = vadd.f32 %v5354_v34, %v3609_v20  ;;  %v4727_v35 = vpack.c.bf16 %v4031_v5, %v4031_v5 }
 0x20f   : > { %v3542_v63 = vpop.f32.mrf.mxu1  ;;  %v3875_v59 = vpop.f32.mrf.mxu0  ;;  %v3613_v62 = vadd.f32 %v5312_v61, %v6943_v53 }
 0x210   : > { %v4732_v27 = vpack.c.bf16 %v4036_v25, %v4036_v25  ;;  %v4034_v15 = vmax.f32 %v3998_v55, 0.0  ;;  %v4001_v57 = vadd.f32 %v6972_v44, %v3958_v24  ;;  %4212 = vst.msk [vmem:[%s6983_s25 + $0x44] sm:$0xf] %vm4194_vm8, %v4727_v35  ;;  %v3956_v51 = vadd.f32 %v3875_v59, %v3607_v29 }
 0x211   : > { %v5315_v12 = vpop.f32.mrf.mxu1  ;;  %v5357_v8 = vpop.f32.mrf.mxu0  ;;  %v3611_v22 = vadd.f32 %v3542_v63, %v6946_v14 }
 0x212   : > { %4217 = vst.msk [vmem:[%s6983_s25 + $0x58] sm:$0xf] %vm4194_vm8, %v4732_v27  ;;  %v4730_v52 = vpack.c.bf16 %v4034_v15, %v4034_v15  ;;  %v4037_v21 = vmax.f32 %v4001_v57, 0.0  ;;  %v3961_v39 = vadd.f32 %v5357_v8, %v3612_v49  ;;  %v3999_v16 = vadd.f32 %v6972_v44, %v3956_v51 }
 0x213   : > { %v3555_v38 = vpop.f32.mrf.mxu1  ;;  %v3888_v17 = vpop.f32.mrf.mxu0  ;;  %v3616_v42 = vadd.f32 %v5315_v12, %v6949_v2 }
 0x214   : > { %4215 = vst.msk [vmem:[%s6983_s25 + $0x50] sm:$0xf] %vm4194_vm8, %v4730_v52  ;;  %v4733_v18 = vpack.c.bf16 %v4037_v21, %v4037_v21  ;;  %v4004_v36 = vadd.f32 %v6972_v44, %v3961_v39  ;;  %v3959_v3 = vadd.f32 %v3888_v17, %v3610_v50  ;;  %v4035_v26 = vmax.f32 %v3999_v16, 0.0 }
 0x215   : > { %v5316_v30 = vpop.f32.mrf.mxu1  ;;  %v5358_v60 = vpop.f32.mrf.mxu0  ;;  %v3614_v14 = vadd.f32 %v3555_v38, %v6952_v28 }
 0x216   : > { %4218 = vst.msk [vmem:[%s6983_s25 + $0x5c] sm:$0xf] %vm4194_vm8, %v4733_v18  ;;  %v4040_v11 = vmax.f32 %v4004_v36, 0.0  ;;  %v4002_v32 = vadd.f32 %v6972_v44, %v3959_v3  ;;  %v3962_v6 = vadd.f32 %v5358_v60, %v3613_v62  ;;  %v4731_v46 = vpack.c.bf16 %v4035_v26, %v4035_v26 }
 0x217   : > { %v3558_v10 = vpop.f32.mrf.mxu1  ;;  %v3891_v53 = vpop.f32.mrf.mxu0  ;;  %v3617_v20 = vadd.f32 %v5316_v30, %v6955_v54 }
 0x218   : > { %v4736_v37 = vpack.c.bf16 %v4040_v11, %v4040_v11  ;;  %v4038_v47 = vmax.f32 %v4002_v32, 0.0  ;;  %v4005_v31 = vadd.f32 %v6972_v44, %v3962_v6  ;;  %4216 = vst.msk [vmem:[%s6983_s25 + $0x54] sm:$0xf] %vm4194_vm8, %v4731_v46  ;;  %v3960_v41 = vadd.f32 %v3891_v53, %v3611_v22 }
 0x219   : > { %v5319_v19 = vpop.f32.mrf.mxu1  ;;  %v5361_v9 = vpop.f32.mrf.mxu0  ;;  %v3615_v55 = vadd.f32 %v3558_v10, %v6958_v13 }
 0x21a   : > { %4221 = vst.msk [vmem:[%s6983_s25 + $0x68] sm:$0xf] %vm4194_vm8, %v4736_v37  ;;  %v4734_v0 = vpack.c.bf16 %v4038_v47, %v4038_v47  ;;  %v4041_v4 = vmax.f32 %v4005_v31, 0.0  ;;  %v3965_v48 = vadd.f32 %v5361_v9, %v3616_v42  ;;  %v4003_v2 = vadd.f32 %v6972_v44, %v3960_v41 }
 0x21b   : > { %v3571_v56 = vpop.f32.mrf.mxu1  ;;  %v3904_v58 = vpop.f32.mrf.mxu0  ;;  %v3620_v54 = vadd.f32 %v5319_v19, %v6960_v7 }
 0x21c   : > { %4219 = vst.msk [vmem:[%s6983_s25 + $0x60] sm:$0xf] %vm4194_vm8, %v4734_v0  ;;  %v4737_v40 = vpack.c.bf16 %v4041_v4, %v4041_v4  ;;  %v4008_v43 = vadd.f32 %v6972_v44, %v3965_v48  ;;  %v3963_v45 = vadd.f32 %v3904_v58, %v3614_v14  ;;  %v4039_v5 = vmax.f32 %v4003_v2, 0.0 }
 0x21d   : > { %v5362_v61 = vpop.f32.mrf.mxu0  ;;  %v5320_v29 = vpop.f32.mrf.mxu1  ;;  %v3618_v57 = vadd.f32 %v3571_v56, %v6962_v1 }
 0x21e   : > { %4222 = vst.msk [vmem:[%s6983_s25 + $0x6c] sm:$0xf] %vm4194_vm8, %v4737_v40  ;;  %v4044_v28 = vmax.f32 %v4008_v43, 0.0  ;;  %v4006_v34 = vadd.f32 %v6972_v44, %v3963_v45  ;;  %v3966_v25 = vadd.f32 %v5362_v61, %v3617_v20  ;;  %v4735_v24 = vpack.c.bf16 %v4039_v5, %v4039_v5 }
 0x21f   : > { %v3907_v35 = vpop.f32.mrf.mxu0  ;;  %v3574_v8 = vpop.f32.mrf.mxu1  ;;  %v3621_v52 = vadd.f32 %v5320_v29, %v6964_v33 }
 0x220   : > { %v4740_v63 = vpack.c.bf16 %v4044_v28, %v4044_v28  ;;  %v4042_v59 = vmax.f32 %v4006_v34, 0.0  ;;  %v4009_v49 = vadd.f32 %v6972_v44, %v3966_v25  ;;  %4220 = vst.msk [vmem:[%s6983_s25 + $0x64] sm:$0xf] %vm4194_vm8, %v4735_v24  ;;  %v3964_v27 = vadd.f32 %v3907_v35, %v3615_v55 }
 0x221   : > { %v5365_v15 = vpop.f32.mrf.mxu0  ;;  %v3619_v1 = vadd.f32 %v3574_v8, %v6967_v23 }
 0x222   : > { %4225 = vst.msk [vmem:[%s6983_s25 + $0x78] sm:$0xf] %vm4194_vm8, %v4740_v63  ;;  %v4738_v13 = vpack.c.bf16 %v4042_v59, %v4042_v59  ;;  %v4045_v51 = vmax.f32 %v4009_v49, 0.0  ;;  %v3969_v12 = vadd.f32 %v5365_v15, %v3620_v54  ;;  %v4007_v50 = vadd.f32 %v6972_v44, %v3964_v27 }
 0x223   : > { %v3920_v7 = vpop.f32.mrf.mxu0 }
 0x224   : > { %4223 = vst.msk [vmem:[%s6983_s25 + $0x70] sm:$0xf] %vm4194_vm8, %v4738_v13  ;;  %v4741_v21 = vpack.c.bf16 %v4045_v51, %v4045_v51  ;;  %v4012_v39 = vadd.f32 %v6972_v44, %v3969_v12  ;;  %v3967_v16 = vadd.f32 %v3920_v7, %v3618_v57  ;;  %v4043_v38 = vmax.f32 %v4007_v50, 0.0 }
 0x225   : > { %v5366_v17 = vpop.f32.mrf.mxu0 }
 0x226   : > { %4226 = vst.msk [vmem:[%s6983_s25 + $0x7c] sm:$0xf] %vm4194_vm8, %v4741_v21  ;;  %v4048_v62 = vmax.f32 %v4012_v39, 0.0  ;;  %v4010_v18 = vadd.f32 %v6972_v44, %v3967_v16  ;;  %v3970_v36 = vadd.f32 %v5366_v17, %v3621_v52  ;;  %v4739_v3 = vpack.c.bf16 %v4043_v38, %v4043_v38 }
 0x227   : > { %v3923_v33 = vpop.f32.mrf.mxu0 }
 0x228   : > { %v4744_v26 = vpack.c.bf16 %v4048_v62, %v4048_v62  ;;  %v4046_v30 = vmax.f32 %v4010_v18, 0.0  ;;  %v4013_v60 = vadd.f32 %v6972_v44, %v3970_v36  ;;  %v3968_v11 = vadd.f32 %v3923_v33, %v3619_v1  ;;  %4224 = vst.msk [vmem:[%s6983_s25 + $0x74] sm:$0xf] %vm4194_vm8, %v4739_v3 }
 0x22a   : > { %4229 = vst.msk [vmem:[%s6983_s25 + $0x88] sm:$0xf] %vm4194_vm8, %v4744_v26  ;;  %v4742_v32 = vpack.c.bf16 %v4046_v30, %v4046_v30  ;;  %v4049_v6 = vmax.f32 %v4013_v60, 0.0  ;;  %v4011_v23 = vadd.f32 %v6972_v44, %v3968_v11 }
 0x22c   : > { %4227 = vst.msk [vmem:[%s6983_s25 + $0x80] sm:$0xf] %vm4194_vm8, %v4742_v32  ;;  %v4745_v22 = vpack.c.bf16 %v4049_v6, %v4049_v6  ;;  %v4047_v46 = vmax.f32 %v4011_v23, 0.0 }
 0x22e   : > { %4230 = vst.msk [vmem:[%s6983_s25 + $0x8c] sm:$0xf] %vm4194_vm8, %v4745_v22  ;;  %v4743_v10 = vpack.c.bf16 %v4047_v46, %v4047_v46 }
 0x230   : > { %4228 = vst.msk [vmem:[%s6983_s25 + $0x84] sm:$0xf] %vm4194_vm8, %v4743_v10 }
 0x231 PF: > { %s13_s14 = sadd.s32 1, %s5542_s14   ;;  %s7188_s12 = smov %s5538_s13 }
 0x232   : > { %p10_p5 = scmp.ge.s32.totalorder %s13_s14, 4   ;;  %s7189_s13 = smov %s7191_s15 }
 0x234   :  { %12 = sbr.rel (!%p10_p5) target bundleno = 2 (0x2), region = 70 }

</bundles_post_ra>
